<compile_context>
chip_gen: v5e
topology: v5e:2x2
jax: 0.10.0
libtpu: 0.0.40
codegen_flags: <defaults>
</compile_context>

<pallas_src>
import jax
import jax.numpy as jnp
from jax import lax
from jax.experimental import pallas as pl
from jax.experimental.pallas import tpu as pltpu

_LANE = 128      # TPU vreg lane width  (last dim)
_SUBLANE = 8     # TPU vreg sublane width (second-to-last dim)
_PREC = lax.Precision.HIGHEST   # reference only
_NEG_INF = -1e30


def _round_up(x, m):
    return (x + m - 1) // m * m


def _pick_tn(vp):
    """Vocab tile width: biggest of {2048..128} dividing the padded vocab."""
    for tn in (2048, 1024, 512, 256, 128):
        if vp % tn == 0:
            return tn
    return vp


# --------------------------------------------------------------------------- #
# Kernel
# --------------------------------------------------------------------------- #
def _luong_decoder_kernel(
    ids_ref,       # SMEM (Bp,)          int32 token ids (scalar prefetch)
    emb_ref,       # HBM  (vocab, Hp)    f32 embedding table
    h_ref,         # VMEM (Bp, Hp)       f32 previous hidden state
    enc_ref,       # VMEM (Bp, Lp, Hp)   f32 encoder outputs, batch-major, padded
    lmask_ref,     # VMEM (1, Lp)        f32 additive length mask (0 / -1e30)
    w_gx_ref,      # VMEM (Hp, 3Hp)      bf16 GRU input  weights [r|z|n]
    w_gh_ref,      # VMEM (Hp, 3Hp)      bf16 GRU hidden weights [r|z|n]
    b_gx_ref,      # VMEM (1, 3Hp)       f32
    b_gh_ref,      # VMEM (1, 3Hp)       f32
    w_cat_h_ref,   # VMEM (Hp, Hp)       bf16 concat Linear, rnn_output half
    w_cat_c_ref,   # VMEM (Hp, Hp)       bf16 concat Linear, context half
    b_cat_ref,     # VMEM (1, Hp)        f32
    w_out_ref,     # VMEM (Hp, TN)       bf16 output Linear tile (vocab grid)
    b_out_ref,     # VMEM (1, TN)        f32  (padded vocab entries = -1e30)
    out_ref,       # VMEM (Bp, Vp)       f32 softmax probabilities (resident)
    hid_ref,       # VMEM (Bp, Hp)       f32 new hidden state
    x_scr,         # VMEM (Bp, Hp)       f32  scratch: gathered embedding rows
    cat_scr,       # VMEM (Bp, Hp)       bf16 scratch: concat-Linear output
    logit_scr,     # VMEM (Bp, Vp)       f32  scratch: accumulated logits
    gather_sem,    # single shared DMA semaphore for the embedding gather
):
    v = pl.program_id(0)
    nv = pl.num_programs(0)
    bp, hp = hid_ref.shape
    tn = w_out_ref.shape[1]

    # ------------------------------------------------------------------ v == 0
    # Recurrent cell + attention + concat Linear run once; results persist in
    # VMEM scratch across the vocab-tile grid.
    @pl.when(v == 0)
    def _():
        # Embedding gather: one row-DMA per batch element, all signalled on a
        # single DMA semaphore.  Scalar id reads happen before any wait.
        copies = []
        for b in range(bp):
            cp = pltpu.make_async_copy(
                emb_ref.at[pl.ds(ids_ref[b], 1)], x_scr.at[pl.ds(b, 1)], gather_sem)
            cp.start()
            copies.append(cp)
        # TODO(synk): embedding_dropout / GRU dropout omitted (eval-mode identity).

        h = h_ref[...]                                            # (Bp, Hp) f32
        # h-side GRU matmul overlaps the gather DMAs (waits come after).
        gh = jnp.dot(h.astype(jnp.bfloat16), w_gh_ref[...],
                     preferred_element_type=jnp.float32) + b_gh_ref[...]
        for cp in copies:
            cp.wait()
        gx = jnp.dot(x_scr[...].astype(jnp.bfloat16), w_gx_ref[...],
                     preferred_element_type=jnp.float32) + b_gx_ref[...]

        # Gate slices sit on 128-aligned lane offsets (free views).
        r = jax.nn.sigmoid(gx[:, 0 * hp:1 * hp] + gh[:, 0 * hp:1 * hp])
        z = jax.nn.sigmoid(gx[:, 1 * hp:2 * hp] + gh[:, 1 * hp:2 * hp])
        n = jnp.tanh(gx[:, 2 * hp:3 * hp] + r * gh[:, 2 * hp:3 * hp])
        h_new = (1.0 - z) * n + z * h                             # rnn_output
        hid_ref[...] = h_new

        # Luong 'dot' attention.  Scores via VPU multiply + lane reduce: both
        # operands are lane-last, so no per-step relayout/transpose is needed.
        enc = enc_ref[...]                                        # (Bp, Lp, Hp)
        scores = jnp.sum(h_new[:, None, :] * enc, axis=-1) + lmask_ref[...]
        scores = scores - jnp.max(scores, axis=-1, keepdims=True)
        e = jnp.exp(scores)
        attn_w = e * pl.reciprocal(jnp.sum(e, axis=-1, keepdims=True), approx=True)
        context = jnp.einsum("bql,blh->bqh", attn_w[:, None, :], enc,
                             preferred_element_type=jnp.float32)[:, 0, :]

        # concat Linear + tanh as two accumulating matmuls (no concat).
        cat_scr[...] = jnp.tanh(
            jnp.dot(h_new.astype(jnp.bfloat16), w_cat_h_ref[...],
                    preferred_element_type=jnp.float32)
            + jnp.dot(context.astype(jnp.bfloat16), w_cat_c_ref[...],
                      preferred_element_type=jnp.float32)
            + b_cat_ref[...]).astype(jnp.bfloat16)

    # -------------------------------------------------------------- every tile
    # Output Linear for this vocab tile; the next w_out tile DMA is pipelined
    # behind this matmul by the Pallas grid pipeline.
    off = pl.multiple_of(v * tn, 128)
    logit_scr[:, pl.ds(off, tn)] = jnp.dot(
        cat_scr[...], w_out_ref[...],
        preferred_element_type=jnp.float32) + b_out_ref[...]

    # ---------------------------------------------------------------- epilogue
    # Exact softmax over the full (padded) vocab; padded columns carry a -1e30
    # bias so their probability is exactly 0.  Exact reciprocal for the
    # returned probabilities (approx kept only for the attention softmax).
    @pl.when(v == nv - 1)
    def _():
        lg = logit_scr[...]
        lg = lg - jnp.max(lg, axis=-1, keepdims=True)
        el = jnp.exp(lg)
        out_ref[...] = el / jnp.sum(el, axis=-1, keepdims=True)


# --------------------------------------------------------------------------- #
# One-time preparation (hoisted out of the decode loop)
# --------------------------------------------------------------------------- #
def prepare_params(raw):
    """Pad (lane=128), split and bf16-cast the PyTorch-layout weights."""
    emb = raw["embedding"]
    vocab, H = emb.shape
    V = raw["out_w"].shape[0]
    Hp, Vp = _round_up(H, _LANE), _round_up(V, _LANE)

    # Embedding stays f32 (gather traffic is tiny: Bp rows per step).
    emb_p = jnp.zeros((vocab, Hp), jnp.float32).at[:, :H].set(emb)

    def pack_gru(w, b):                       # w: (3H, H) PyTorch, b: (3H,)
        wp = jnp.zeros((Hp, 3 * Hp), jnp.float32)
        bp = jnp.zeros((1, 3 * Hp), jnp.float32)
        for g in range(3):                    # 0:r  1:z  2:n  (128-aligned blocks)
            wp = wp.at[:H, g * Hp:g * Hp + H].set(w[g * H:(g + 1) * H].T)
            bp = bp.at[0, g * Hp:g * Hp + H].set(b[g * H:(g + 1) * H])
        return wp.astype(jnp.bfloat16), bp

    w_gx, b_gx = pack_gru(raw["gru_w_ih"], raw["gru_b_ih"])
    w_gh, b_gh = pack_gru(raw["gru_w_hh"], raw["gru_b_hh"])

    w_cat_h = (jnp.zeros((Hp, Hp), jnp.float32)
               .at[:H, :H].set(raw["cat_w"][:, :H].T).astype(jnp.bfloat16))
    w_cat_c = (jnp.zeros((Hp, Hp), jnp.float32)
               .at[:H, :H].set(raw["cat_w"][:, H:].T).astype(jnp.bfloat16))
    b_cat = jnp.zeros((1, Hp), jnp.float32).at[0, :H].set(raw["cat_b"])

    w_out = (jnp.zeros((Hp, Vp), jnp.float32)
             .at[:H, :V].set(raw["out_w"].T).astype(jnp.bfloat16))
    b_out = jnp.full((1, Vp), _NEG_INF, jnp.float32).at[0, :V].set(raw["out_b"])

    return dict(embedding=emb_p, w_gx=w_gx, w_gh=w_gh, b_gx=b_gx, b_gh=b_gh,
                w_cat_h=w_cat_h, w_cat_c=w_cat_c, b_cat=b_cat,
                w_out=w_out, b_out=b_out)


def prepare_encoder_outputs(encoder_outputs, hp):
    """(L, B, H) seq-major (PyTorch) -> (Bp, Lp, Hp) padded, batch-major, plus a
    precomputed additive length mask.  Call once before the decode loop."""
    L, B, H = encoder_outputs.shape
    bp, lp = _round_up(B, _SUBLANE), _round_up(L, _SUBLANE)
    enc_bm = jnp.transpose(encoder_outputs, (1, 0, 2))
    enc_p = jnp.zeros((bp, lp, hp), jnp.float32).at[:B, :L, :H].set(enc_bm)
    lmask = jnp.where(jnp.arange(lp) < L, 0.0, _NEG_INF).astype(jnp.float32)[None, :]
    return enc_p, lmask


def pad_hidden(last_hidden, hp):
    """(1, B, H) -> (Bp, Hp) zero-padded hidden state."""
    _, B, H = last_hidden.shape
    bp = _round_up(B, _SUBLANE)
    return jnp.zeros((bp, hp), jnp.float32).at[:B, :H].set(last_hidden[0])


# --------------------------------------------------------------------------- #
# Per-timestep decoder step (the hot path)
# --------------------------------------------------------------------------- #
def luong_attn_decoder_step(kparams, input_step, hidden_p, enc_p, lmask_p):
    """One decoder timestep.

    input_step: (1, B) int32 token ids (PyTorch layout)
    hidden_p:   (Bp, Hp) f32 padded hidden state
    enc_p:      (Bp, Lp, Hp) f32 padded, batch-major encoder outputs
    lmask_p:    (1, Lp) f32 additive length mask
    returns (probs_padded (Bp, Vp), new_hidden_padded (Bp, Hp))
    """
    B = input_step.shape[1]
    Bp, Hp = hidden_p.shape
    Lp = enc_p.shape[1]
    Vp = kparams["w_out"].shape[1]
    tn = _pick_tn(Vp)
    nv = Vp // tn

    ids_p = jnp.zeros((Bp,), jnp.int32).at[:B].set(input_step[0].astype(jnp.int32))

    # Constant block indices -> loaded into VMEM once, resident across the grid.
    def c2(v, ids): return (0, 0)
    def c3(v, ids): return (0, 0, 0)

    grid_spec = pltpu.PrefetchScalarGridSpec(
        num_scalar_prefetch=1,                 # token ids -> SMEM
        grid=(nv,),                            # vocab tiles (w_out streaming)
        in_specs=[
            pl.BlockSpec(memory_space=pl.ANY),             # embedding (HBM)
            pl.BlockSpec((Bp, Hp), c2),                    # hidden
            pl.BlockSpec((Bp, Lp, Hp), c3),                # encoder outputs
            pl.BlockSpec((1, Lp), c2),                     # length mask
            pl.BlockSpec((Hp, 3 * Hp), c2),                # w_gx
            pl.BlockSpec((Hp, 3 * Hp), c2),                # w_gh
            pl.BlockSpec((1, 3 * Hp), c2),                 # b_gx
            pl.BlockSpec((1, 3 * Hp), c2),                 # b_gh
            pl.BlockSpec((Hp, Hp), c2),                    # w_cat_h
            pl.BlockSpec((Hp, Hp), c2),                    # w_cat_c
            pl.BlockSpec((1, Hp), c2),                     # b_cat
            pl.BlockSpec((Hp, tn), lambda v, ids: (0, v)),  # w_out tile
            pl.BlockSpec((1, tn), lambda v, ids: (0, v)),   # b_out tile
        ],
        out_specs=(
            pl.BlockSpec((Bp, Vp), c2),                    # probabilities
            pl.BlockSpec((Bp, Hp), c2),                    # new hidden
        ),
        scratch_shapes=[
            pltpu.VMEM((Bp, Hp), jnp.float32),     # gathered embedding rows
            pltpu.VMEM((Bp, Hp), jnp.bfloat16),    # concat-Linear output
            pltpu.VMEM((Bp, Vp), jnp.float32),     # logits accumulator
            pltpu.SemaphoreType.DMA,               # shared gather semaphore
        ],
    )

    return pl.pallas_call(
        _luong_decoder_kernel,
        out_shape=(jax.ShapeDtypeStruct((Bp, Vp), jnp.float32),
                   jax.ShapeDtypeStruct((Bp, Hp), jnp.float32)),
        grid_spec=grid_spec,
        compiler_params=pltpu.CompilerParams(
            dimension_semantics=("arbitrary",),            # state carried across tiles
            vmem_limit_bytes=32 * 1024 * 1024),            # tiled design stays well under
    )(ids_p, kparams["embedding"], hidden_p, enc_p, lmask_p,
      kparams["w_gx"], kparams["w_gh"], kparams["b_gx"], kparams["b_gh"],
      kparams["w_cat_h"], kparams["w_cat_c"], kparams["b_cat"],
      kparams["w_out"], kparams["b_out"])


# --------------------------------------------------------------------------- #
# Pure-JAX reference (PyTorch layouts / semantics) and param init
# --------------------------------------------------------------------------- #
def reference_forward(raw, input_step, last_hidden, encoder_outputs):
    H = last_hidden.shape[-1]
    x = raw["embedding"][input_step[0]]                    # (B, H); dropout = identity
    h = last_hidden[0]                                     # (B, H)
    gi = jnp.dot(x, raw["gru_w_ih"].T, precision=_PREC) + raw["gru_b_ih"]
    gh = jnp.dot(h, raw["gru_w_hh"].T, precision=_PREC) + raw["gru_b_hh"]
    i_r, i_z, i_n = gi[:, :H], gi[:, H:2 * H], gi[:, 2 * H:]
    h_r, h_z, h_n = gh[:, :H], gh[:, H:2 * H], gh[:, 2 * H:]
    r = jax.nn.sigmoid(i_r + h_r)
    z = jax.nn.sigmoid(i_z + h_z)
    n = jnp.tanh(i_n + r * h_n)
    h_new = (1.0 - z) * n + z * h                          # rnn_output (B, H)
    scores = jnp.einsum("bh,lbh->bl", h_new, encoder_outputs, precision=_PREC)
    attn_w = jax.nn.softmax(scores, axis=1)                # (B, L)
    context = jnp.einsum("bl,lbh->bh", attn_w, encoder_outputs, precision=_PREC)
    cat_in = jnp.concatenate([h_new, context], axis=1)
    cat_out = jnp.tanh(jnp.dot(cat_in, raw["cat_w"].T, precision=_PREC) + raw["cat_b"])
    logits = jnp.dot(cat_out, raw["out_w"].T, precision=_PREC) + raw["out_b"]
    return jax.nn.softmax(logits, axis=1), h_new[None]


def init_raw_params(key, vocab_size, hidden_size, output_size):
    ks = jax.random.split(key, 9)
    s = 0.1
    H, V = hidden_size, output_size
    return {
        "embedding": jax.random.normal(ks[0], (vocab_size, H), jnp.float32) * s,
        "gru_w_ih": jax.random.normal(ks[1], (3 * H, H), jnp.float32) * s,   # PyTorch layout
        "gru_w_hh": jax.random.normal(ks[2], (3 * H, H), jnp.float32) * s,
        "gru_b_ih": jax.random.normal(ks[3], (3 * H,), jnp.float32) * s,
        "gru_b_hh": jax.random.normal(ks[4], (3 * H,), jnp.float32) * s,
        "cat_w": jax.random.normal(ks[5], (H, 2 * H), jnp.float32) * s,
        "cat_b": jax.random.normal(ks[6], (H,), jnp.float32) * s,
        "out_w": jax.random.normal(ks[7], (V, H), jnp.float32) * s,
        "out_b": jax.random.normal(ks[8], (V,), jnp.float32) * s,
    }


if __name__ == "__main__":
    B = 2            # batch
    H = 32           # hidden_size
    L = 10           # encoder max length (deliberately not a multiple of 8)
    VOCAB = 50       # embedding rows
    V = 40           # output_size

    key = jax.random.PRNGKey(0)
    kparam_key, k1, k2, k3 = jax.random.split(key, 4)

    raw = init_raw_params(kparam_key, VOCAB, H, V)
    input_step = jax.random.randint(k1, (1, B), 0, VOCAB, dtype=jnp.int32)
    last_hidden = jax.random.normal(k2, (1, B, H), jnp.float32)
    encoder_outputs = jax.random.normal(k3, (L, B, H), jnp.float32)

    # Pure-JAX f32 reference (PyTorch semantics).
    ref_out, ref_hid = reference_forward(raw, input_step, last_hidden, encoder_outputs)

    # One-time prep, hoisted out of the decode loop.
    kparams = prepare_params(raw)
    Hp = kparams["w_out"].shape[0]
    enc_p, lmask_p = prepare_encoder_outputs(encoder_outputs, Hp)
    hid_p = pad_hidden(last_hidden, Hp)

    step = jax.jit(luong_attn_decoder_step)
    probs_p, new_hid_p = step(kparams, input_step, hid_p, enc_p, lmask_p)
    jax.block_until_ready((probs_p, new_hid_p))

    output = probs_p[:B, :V]                # (B, V)   softmax over true vocab
    hidden = new_hid_p[:B, :H][None]        # (1, B, H) to match PyTorch

    assert output.shape == (B, V) and hidden.shape == (1, B, H)
    # Exact reciprocal in the output softmax -> rows sum to 1 tightly.
    assert jnp.allclose(jnp.sum(output, axis=1), 1.0, atol=1e-3)
    # bf16 matmul weights (f32 accumulation) -> slightly relaxed tolerances
    # against the f32 HIGHEST-precision reference.
    assert jnp.allclose(output, ref_out, atol=5e-3, rtol=5e-2)
    assert jnp.allclose(hidden, ref_hid, atol=2e-2, rtol=2e-2)
    print("KERNEL_OK")
</pallas_src>

<mosaic_0001>
module attributes {stable_mosaic.version = 11 : i64} {
  func.func @_luong_decoder_kernel(%arg0: i32, %arg1: memref<8xi32, #tpu.memory_space<smem>>, %arg2: memref<50x128xf32, #tpu.memory_space<any>>, %arg3: memref<8x128xf32, #tpu.memory_space<vmem>>, %arg4: memref<8x16x128xf32, #tpu.memory_space<vmem>>, %arg5: memref<1x16xf32, #tpu.memory_space<vmem>>, %arg6: memref<128x384xbf16, #tpu.memory_space<vmem>>, %arg7: memref<128x384xbf16, #tpu.memory_space<vmem>>, %arg8: memref<1x384xf32, #tpu.memory_space<vmem>>, %arg9: memref<1x384xf32, #tpu.memory_space<vmem>>, %arg10: memref<128x128xbf16, #tpu.memory_space<vmem>>, %arg11: memref<128x128xbf16, #tpu.memory_space<vmem>>, %arg12: memref<1x128xf32, #tpu.memory_space<vmem>>, %arg13: memref<128x128xbf16, #tpu.memory_space<vmem>>, %arg14: memref<1x128xf32, #tpu.memory_space<vmem>>, %arg15: memref<8x128xf32, #tpu.memory_space<vmem>>, %arg16: memref<8x128xf32, #tpu.memory_space<vmem>>, %arg17: memref<8x128xf32, #tpu.memory_space<vmem>>, %arg18: memref<8x128xbf16, #tpu.memory_space<vmem>>, %arg19: memref<8x128xf32, #tpu.memory_space<vmem>>, %arg20: memref<!tpu.dma_semaphore, #tpu.memory_space<semaphore_mem>>) attributes {dimension_semantics = [#tpu.dimension_semantics<arbitrary>], iteration_bounds = array<i64: 1>, scalar_prefetch = 1 : i64, scratch_operands = 4 : i64, tpu.core_type = #tpu.core_type<tc>, window_params = [{}, {pipeline_mode = #tpu.pipeline_mode<synchronous>, transform_indices = @transform_1, window_bounds = array<i64: 8, 128>}, {pipeline_mode = #tpu.pipeline_mode<synchronous>, transform_indices = @transform_2, window_bounds = array<i64: 8, 16, 128>}, {pipeline_mode = #tpu.pipeline_mode<synchronous>, transform_indices = @transform_3, window_bounds = array<i64: 1, 16>}, {pipeline_mode = #tpu.pipeline_mode<synchronous>, transform_indices = @transform_4, window_bounds = array<i64: 128, 384>}, {pipeline_mode = #tpu.pipeline_mode<synchronous>, transform_indices = @transform_5, window_bounds = array<i64: 128, 384>}, {pipeline_mode = #tpu.pipeline_mode<synchronous>, transform_indices = @transform_6, window_bounds = array<i64: 1, 384>}, {pipeline_mode = #tpu.pipeline_mode<synchronous>, transform_indices = @transform_7, window_bounds = array<i64: 1, 384>}, {pipeline_mode = #tpu.pipeline_mode<synchronous>, transform_indices = @transform_8, window_bounds = array<i64: 128, 128>}, {pipeline_mode = #tpu.pipeline_mode<synchronous>, transform_indices = @transform_9, window_bounds = array<i64: 128, 128>}, {pipeline_mode = #tpu.pipeline_mode<synchronous>, transform_indices = @transform_10, window_bounds = array<i64: 1, 128>}, {transform_indices = @transform_11, window_bounds = array<i64: 128, 128>}, {transform_indices = @transform_12, window_bounds = array<i64: 1, 128>}, {pipeline_mode = #tpu.pipeline_mode<synchronous>, transform_indices = @transform_13, window_bounds = array<i64: 8, 128>}, {pipeline_mode = #tpu.pipeline_mode<synchronous>, transform_indices = @transform_14, window_bounds = array<i64: 8, 128>}]} {
    %c0_i32 = arith.constant 0 : i32
    %0 = arith.cmpi eq, %arg0, %c0_i32 : i32
    %1 = arith.extui %0 : i1 to i32
    %c0_i32_0 = arith.constant 0 : i32
    %2 = arith.cmpi ne, %1, %c0_i32_0 : i32
    scf.if %2 {
      %c0_9 = arith.constant 0 : index
      %16 = memref.load %arg1[%c0_9] : memref<8xi32, #tpu.memory_space<smem>>
      %c0_i32_10 = arith.constant 0 : i32
      %17 = tpu.memref_slice %arg2[%16, %c0_i32_10] : memref<50x128xf32, #tpu.memory_space<any>> -> memref<1x128xf32, #tpu.memory_space<any>>
      %c0_i32_11 = arith.constant 0 : i32
      %c0_i32_12 = arith.constant 0 : i32
      %18 = tpu.memref_slice %arg17[%c0_i32_11, %c0_i32_12] : memref<8x128xf32, #tpu.memory_space<vmem>> -> memref<1x128xf32, #tpu.memory_space<vmem>>
      tpu.enqueue_dma source(%17 : memref<1x128xf32, #tpu.memory_space<any>>) target(%18 : memref<1x128xf32, #tpu.memory_space<vmem>>) target_semaphore(%arg20 : memref<!tpu.dma_semaphore, #tpu.memory_space<semaphore_mem>>)
      %c1 = arith.constant 1 : index
      %19 = memref.load %arg1[%c1] : memref<8xi32, #tpu.memory_space<smem>>
      %c0_i32_13 = arith.constant 0 : i32
      %20 = tpu.memref_slice %arg2[%19, %c0_i32_13] : memref<50x128xf32, #tpu.memory_space<any>> -> memref<1x128xf32, #tpu.memory_space<any>>
      %c1_i32 = arith.constant 1 : i32
      %c0_i32_14 = arith.constant 0 : i32
      %21 = tpu.memref_slice %arg17[%c1_i32, %c0_i32_14] : memref<8x128xf32, #tpu.memory_space<vmem>> -> memref<1x128xf32, #tpu.memory_space<vmem>>
      tpu.enqueue_dma source(%20 : memref<1x128xf32, #tpu.memory_space<any>>) target(%21 : memref<1x128xf32, #tpu.memory_space<vmem>>) target_semaphore(%arg20 : memref<!tpu.dma_semaphore, #tpu.memory_space<semaphore_mem>>)
      %c2 = arith.constant 2 : index
      %22 = memref.load %arg1[%c2] : memref<8xi32, #tpu.memory_space<smem>>
      %c0_i32_15 = arith.constant 0 : i32
      %23 = tpu.memref_slice %arg2[%22, %c0_i32_15] : memref<50x128xf32, #tpu.memory_space<any>> -> memref<1x128xf32, #tpu.memory_space<any>>
      %c2_i32 = arith.constant 2 : i32
      %c0_i32_16 = arith.constant 0 : i32
      %24 = tpu.memref_slice %arg17[%c2_i32, %c0_i32_16] : memref<8x128xf32, #tpu.memory_space<vmem>> -> memref<1x128xf32, #tpu.memory_space<vmem>>
      tpu.enqueue_dma source(%23 : memref<1x128xf32, #tpu.memory_space<any>>) target(%24 : memref<1x128xf32, #tpu.memory_space<vmem>>) target_semaphore(%arg20 : memref<!tpu.dma_semaphore, #tpu.memory_space<semaphore_mem>>)
      %c3 = arith.constant 3 : index
      %25 = memref.load %arg1[%c3] : memref<8xi32, #tpu.memory_space<smem>>
      %c0_i32_17 = arith.constant 0 : i32
      %26 = tpu.memref_slice %arg2[%25, %c0_i32_17] : memref<50x128xf32, #tpu.memory_space<any>> -> memref<1x128xf32, #tpu.memory_space<any>>
      %c3_i32 = arith.constant 3 : i32
      %c0_i32_18 = arith.constant 0 : i32
      %27 = tpu.memref_slice %arg17[%c3_i32, %c0_i32_18] : memref<8x128xf32, #tpu.memory_space<vmem>> -> memref<1x128xf32, #tpu.memory_space<vmem>>
      tpu.enqueue_dma source(%26 : memref<1x128xf32, #tpu.memory_space<any>>) target(%27 : memref<1x128xf32, #tpu.memory_space<vmem>>) target_semaphore(%arg20 : memref<!tpu.dma_semaphore, #tpu.memory_space<semaphore_mem>>)
      %c4 = arith.constant 4 : index
      %28 = memref.load %arg1[%c4] : memref<8xi32, #tpu.memory_space<smem>>
      %c0_i32_19 = arith.constant 0 : i32
      %29 = tpu.memref_slice %arg2[%28, %c0_i32_19] : memref<50x128xf32, #tpu.memory_space<any>> -> memref<1x128xf32, #tpu.memory_space<any>>
      %c4_i32 = arith.constant 4 : i32
      %c0_i32_20 = arith.constant 0 : i32
      %30 = tpu.memref_slice %arg17[%c4_i32, %c0_i32_20] : memref<8x128xf32, #tpu.memory_space<vmem>> -> memref<1x128xf32, #tpu.memory_space<vmem>>
      tpu.enqueue_dma source(%29 : memref<1x128xf32, #tpu.memory_space<any>>) target(%30 : memref<1x128xf32, #tpu.memory_space<vmem>>) target_semaphore(%arg20 : memref<!tpu.dma_semaphore, #tpu.memory_space<semaphore_mem>>)
      %c5 = arith.constant 5 : index
      %31 = memref.load %arg1[%c5] : memref<8xi32, #tpu.memory_space<smem>>
      %c0_i32_21 = arith.constant 0 : i32
      %32 = tpu.memref_slice %arg2[%31, %c0_i32_21] : memref<50x128xf32, #tpu.memory_space<any>> -> memref<1x128xf32, #tpu.memory_space<any>>
      %c5_i32 = arith.constant 5 : i32
      %c0_i32_22 = arith.constant 0 : i32
      %33 = tpu.memref_slice %arg17[%c5_i32, %c0_i32_22] : memref<8x128xf32, #tpu.memory_space<vmem>> -> memref<1x128xf32, #tpu.memory_space<vmem>>
      tpu.enqueue_dma source(%32 : memref<1x128xf32, #tpu.memory_space<any>>) target(%33 : memref<1x128xf32, #tpu.memory_space<vmem>>) target_semaphore(%arg20 : memref<!tpu.dma_semaphore, #tpu.memory_space<semaphore_mem>>)
      %c6 = arith.constant 6 : index
      %34 = memref.load %arg1[%c6] : memref<8xi32, #tpu.memory_space<smem>>
      %c0_i32_23 = arith.constant 0 : i32
      %35 = tpu.memref_slice %arg2[%34, %c0_i32_23] : memref<50x128xf32, #tpu.memory_space<any>> -> memref<1x128xf32, #tpu.memory_space<any>>
      %c6_i32 = arith.constant 6 : i32
      %c0_i32_24 = arith.constant 0 : i32
      %36 = tpu.memref_slice %arg17[%c6_i32, %c0_i32_24] : memref<8x128xf32, #tpu.memory_space<vmem>> -> memref<1x128xf32, #tpu.memory_space<vmem>>
      tpu.enqueue_dma source(%35 : memref<1x128xf32, #tpu.memory_space<any>>) target(%36 : memref<1x128xf32, #tpu.memory_space<vmem>>) target_semaphore(%arg20 : memref<!tpu.dma_semaphore, #tpu.memory_space<semaphore_mem>>)
      %c7 = arith.constant 7 : index
      %37 = memref.load %arg1[%c7] : memref<8xi32, #tpu.memory_space<smem>>
      %c0_i32_25 = arith.constant 0 : i32
      %38 = tpu.memref_slice %arg2[%37, %c0_i32_25] : memref<50x128xf32, #tpu.memory_space<any>> -> memref<1x128xf32, #tpu.memory_space<any>>
      %c7_i32 = arith.constant 7 : i32
      %c0_i32_26 = arith.constant 0 : i32
      %39 = tpu.memref_slice %arg17[%c7_i32, %c0_i32_26] : memref<8x128xf32, #tpu.memory_space<vmem>> -> memref<1x128xf32, #tpu.memory_space<vmem>>
      tpu.enqueue_dma source(%38 : memref<1x128xf32, #tpu.memory_space<any>>) target(%39 : memref<1x128xf32, #tpu.memory_space<vmem>>) target_semaphore(%arg20 : memref<!tpu.dma_semaphore, #tpu.memory_space<semaphore_mem>>)
      %c0_27 = arith.constant 0 : index
      %c0_28 = arith.constant 0 : index
      %40 = vector.load %arg3[%c0_27, %c0_28] : memref<8x128xf32, #tpu.memory_space<vmem>>, vector<8x128xf32>
      %41 = arith.truncf %40 : vector<8x128xf32> to vector<8x128xbf16>
      %c0_29 = arith.constant 0 : index
      %c0_30 = arith.constant 0 : index
      %42 = vector.load %arg7[%c0_29, %c0_30] : memref<128x384xbf16, #tpu.memory_space<vmem>>, vector<128x384xbf16>
      %cst_31 = arith.constant dense<0.000000e+00> : vector<8x384xf32>
      %43 = tpu.matmul %41, %42, %cst_31 {dimension_numbers = #tpu.dot_dimension_numbers<[1], [0], [0], [1], [0, 0, 1, 1], [], []>} : vector<8x128xbf16>, vector<128x384xbf16>, vector<8x384xf32> -> vector<8x384xf32>
      %c0_32 = arith.constant 0 : index
      %c0_33 = arith.constant 0 : index
      %44 = vector.load %arg9[%c0_32, %c0_33] : memref<1x384xf32, #tpu.memory_space<vmem>>, vector<1x384xf32>
      %45 = vector.broadcast %44 : vector<1x384xf32> to vector<8x384xf32>
      %46 = arith.addf %43, %45 : vector<8x384xf32>
      %c0_i32_34 = arith.constant 0 : i32
      %47 = tpu.memref_slice %arg2[%16, %c0_i32_34] : memref<50x128xf32, #tpu.memory_space<any>> -> memref<1x128xf32, #tpu.memory_space<any>>
      %c0_i32_35 = arith.constant 0 : i32
      %c0_i32_36 = arith.constant 0 : i32
      %48 = tpu.memref_slice %arg17[%c0_i32_35, %c0_i32_36] : memref<8x128xf32, #tpu.memory_space<vmem>> -> memref<1x128xf32, #tpu.memory_space<vmem>>
      tpu.wait_dma2 semaphore(%arg20 : memref<!tpu.dma_semaphore, #tpu.memory_space<semaphore_mem>>) src(%47 : memref<1x128xf32, #tpu.memory_space<any>>) dst(%48 : memref<1x128xf32, #tpu.memory_space<vmem>>)
      %c0_i32_37 = arith.constant 0 : i32
      %49 = tpu.memref_slice %arg2[%19, %c0_i32_37] : memref<50x128xf32, #tpu.memory_space<any>> -> memref<1x128xf32, #tpu.memory_space<any>>
      %c1_i32_38 = arith.constant 1 : i32
      %c0_i32_39 = arith.constant 0 : i32
      %50 = tpu.memref_slice %arg17[%c1_i32_38, %c0_i32_39] : memref<8x128xf32, #tpu.memory_space<vmem>> -> memref<1x128xf32, #tpu.memory_space<vmem>>
      tpu.wait_dma2 semaphore(%arg20 : memref<!tpu.dma_semaphore, #tpu.memory_space<semaphore_mem>>) src(%49 : memref<1x128xf32, #tpu.memory_space<any>>) dst(%50 : memref<1x128xf32, #tpu.memory_space<vmem>>)
      %c0_i32_40 = arith.constant 0 : i32
      %51 = tpu.memref_slice %arg2[%22, %c0_i32_40] : memref<50x128xf32, #tpu.memory_space<any>> -> memref<1x128xf32, #tpu.memory_space<any>>
      %c2_i32_41 = arith.constant 2 : i32
      %c0_i32_42 = arith.constant 0 : i32
      %52 = tpu.memref_slice %arg17[%c2_i32_41, %c0_i32_42] : memref<8x128xf32, #tpu.memory_space<vmem>> -> memref<1x128xf32, #tpu.memory_space<vmem>>
      tpu.wait_dma2 semaphore(%arg20 : memref<!tpu.dma_semaphore, #tpu.memory_space<semaphore_mem>>) src(%51 : memref<1x128xf32, #tpu.memory_space<any>>) dst(%52 : memref<1x128xf32, #tpu.memory_space<vmem>>)
      %c0_i32_43 = arith.constant 0 : i32
      %53 = tpu.memref_slice %arg2[%25, %c0_i32_43] : memref<50x128xf32, #tpu.memory_space<any>> -> memref<1x128xf32, #tpu.memory_space<any>>
      %c3_i32_44 = arith.constant 3 : i32
      %c0_i32_45 = arith.constant 0 : i32
      %54 = tpu.memref_slice %arg17[%c3_i32_44, %c0_i32_45] : memref<8x128xf32, #tpu.memory_space<vmem>> -> memref<1x128xf32, #tpu.memory_space<vmem>>
      tpu.wait_dma2 semaphore(%arg20 : memref<!tpu.dma_semaphore, #tpu.memory_space<semaphore_mem>>) src(%53 : memref<1x128xf32, #tpu.memory_space<any>>) dst(%54 : memref<1x128xf32, #tpu.memory_space<vmem>>)
      %c0_i32_46 = arith.constant 0 : i32
      %55 = tpu.memref_slice %arg2[%28, %c0_i32_46] : memref<50x128xf32, #tpu.memory_space<any>> -> memref<1x128xf32, #tpu.memory_space<any>>
      %c4_i32_47 = arith.constant 4 : i32
      %c0_i32_48 = arith.constant 0 : i32
      %56 = tpu.memref_slice %arg17[%c4_i32_47, %c0_i32_48] : memref<8x128xf32, #tpu.memory_space<vmem>> -> memref<1x128xf32, #tpu.memory_space<vmem>>
      tpu.wait_dma2 semaphore(%arg20 : memref<!tpu.dma_semaphore, #tpu.memory_space<semaphore_mem>>) src(%55 : memref<1x128xf32, #tpu.memory_space<any>>) dst(%56 : memref<1x128xf32, #tpu.memory_space<vmem>>)
      %c0_i32_49 = arith.constant 0 : i32
      %57 = tpu.memref_slice %arg2[%31, %c0_i32_49] : memref<50x128xf32, #tpu.memory_space<any>> -> memref<1x128xf32, #tpu.memory_space<any>>
      %c5_i32_50 = arith.constant 5 : i32
      %c0_i32_51 = arith.constant 0 : i32
      %58 = tpu.memref_slice %arg17[%c5_i32_50, %c0_i32_51] : memref<8x128xf32, #tpu.memory_space<vmem>> -> memref<1x128xf32, #tpu.memory_space<vmem>>
      tpu.wait_dma2 semaphore(%arg20 : memref<!tpu.dma_semaphore, #tpu.memory_space<semaphore_mem>>) src(%57 : memref<1x128xf32, #tpu.memory_space<any>>) dst(%58 : memref<1x128xf32, #tpu.memory_space<vmem>>)
      %c0_i32_52 = arith.constant 0 : i32
      %59 = tpu.memref_slice %arg2[%34, %c0_i32_52] : memref<50x128xf32, #tpu.memory_space<any>> -> memref<1x128xf32, #tpu.memory_space<any>>
      %c6_i32_53 = arith.constant 6 : i32
      %c0_i32_54 = arith.constant 0 : i32
      %60 = tpu.memref_slice %arg17[%c6_i32_53, %c0_i32_54] : memref<8x128xf32, #tpu.memory_space<vmem>> -> memref<1x128xf32, #tpu.memory_space<vmem>>
      tpu.wait_dma2 semaphore(%arg20 : memref<!tpu.dma_semaphore, #tpu.memory_space<semaphore_mem>>) src(%59 : memref<1x128xf32, #tpu.memory_space<any>>) dst(%60 : memref<1x128xf32, #tpu.memory_space<vmem>>)
      %c0_i32_55 = arith.constant 0 : i32
      %61 = tpu.memref_slice %arg2[%37, %c0_i32_55] : memref<50x128xf32, #tpu.memory_space<any>> -> memref<1x128xf32, #tpu.memory_space<any>>
      %c7_i32_56 = arith.constant 7 : i32
      %c0_i32_57 = arith.constant 0 : i32
      %62 = tpu.memref_slice %arg17[%c7_i32_56, %c0_i32_57] : memref<8x128xf32, #tpu.memory_space<vmem>> -> memref<1x128xf32, #tpu.memory_space<vmem>>
      tpu.wait_dma2 semaphore(%arg20 : memref<!tpu.dma_semaphore, #tpu.memory_space<semaphore_mem>>) src(%61 : memref<1x128xf32, #tpu.memory_space<any>>) dst(%62 : memref<1x128xf32, #tpu.memory_space<vmem>>)
      %c0_58 = arith.constant 0 : index
      %c0_59 = arith.constant 0 : index
      %63 = vector.load %arg17[%c0_58, %c0_59] : memref<8x128xf32, #tpu.memory_space<vmem>>, vector<8x128xf32>
      %64 = arith.truncf %63 : vector<8x128xf32> to vector<8x128xbf16>
      %c0_60 = arith.constant 0 : index
      %c0_61 = arith.constant 0 : index
      %65 = vector.load %arg6[%c0_60, %c0_61] : memref<128x384xbf16, #tpu.memory_space<vmem>>, vector<128x384xbf16>
      %cst_62 = arith.constant dense<0.000000e+00> : vector<8x384xf32>
      %66 = tpu.matmul %64, %65, %cst_62 {dimension_numbers = #tpu.dot_dimension_numbers<[1], [0], [0], [1], [0, 0, 1, 1], [], []>} : vector<8x128xbf16>, vector<128x384xbf16>, vector<8x384xf32> -> vector<8x384xf32>
      %c0_63 = arith.constant 0 : index
      %c0_64 = arith.constant 0 : index
      %67 = vector.load %arg8[%c0_63, %c0_64] : memref<1x384xf32, #tpu.memory_space<vmem>>, vector<1x384xf32>
      %68 = vector.broadcast %67 : vector<1x384xf32> to vector<8x384xf32>
      %69 = arith.addf %66, %68 : vector<8x384xf32>
      %70 = vector.extract_strided_slice %69 {offsets = [0, 0], sizes = [8, 128], strides = [1, 1]} : vector<8x384xf32> to vector<8x128xf32>
      %71 = vector.extract_strided_slice %46 {offsets = [0, 0], sizes = [8, 128], strides = [1, 1]} : vector<8x384xf32> to vector<8x128xf32>
      %72 = arith.addf %70, %71 : vector<8x128xf32>
      %73 = arith.negf %72 : vector<8x128xf32>
      %74 = math.exp %73 : vector<8x128xf32>
      %cst_65 = arith.constant 1.000000e+00 : f32
      %75 = vector.broadcast %cst_65 : f32 to vector<8x128xf32>
      %76 = arith.addf %75, %74 : vector<8x128xf32>
      %77 = arith.divf %75, %76 : vector<8x128xf32>
      %78 = vector.extract_strided_slice %69 {offsets = [0, 128], sizes = [8, 128], strides = [1, 1]} : vector<8x384xf32> to vector<8x128xf32>
      %79 = vector.extract_strided_slice %46 {offsets = [0, 128], sizes = [8, 128], strides = [1, 1]} : vector<8x384xf32> to vector<8x128xf32>
      %80 = arith.addf %78, %79 : vector<8x128xf32>
      %81 = arith.negf %80 : vector<8x128xf32>
      %82 = math.exp %81 : vector<8x128xf32>
      %cst_66 = arith.constant 1.000000e+00 : f32
      %83 = vector.broadcast %cst_66 : f32 to vector<8x128xf32>
      %84 = arith.addf %83, %82 : vector<8x128xf32>
      %85 = arith.divf %83, %84 : vector<8x128xf32>
      %86 = vector.extract_strided_slice %69 {offsets = [0, 256], sizes = [8, 128], strides = [1, 1]} : vector<8x384xf32> to vector<8x128xf32>
      %87 = vector.extract_strided_slice %46 {offsets = [0, 256], sizes = [8, 128], strides = [1, 1]} : vector<8x384xf32> to vector<8x128xf32>
      %88 = arith.mulf %77, %87 : vector<8x128xf32>
      %89 = arith.addf %86, %88 : vector<8x128xf32>
      %90 = math.tanh %89 : vector<8x128xf32>
      %cst_67 = arith.constant 1.000000e+00 : f32
      %91 = vector.broadcast %cst_67 : f32 to vector<8x128xf32>
      %92 = arith.subf %91, %85 : vector<8x128xf32>
      %93 = arith.mulf %92, %90 : vector<8x128xf32>
      %94 = arith.mulf %85, %40 : vector<8x128xf32>
      %95 = arith.addf %93, %94 : vector<8x128xf32>
      %c0_68 = arith.constant 0 : index
      %c0_69 = arith.constant 0 : index
      %96 = vector.load %arg16[%c0_68, %c0_69] : memref<8x128xf32, #tpu.memory_space<vmem>>, vector<8x128xf32>
      tpu.vector_store %arg16[%c0_68, %c0_69], %95 {strides = array<i32>} : memref<8x128xf32, #tpu.memory_space<vmem>>, vector<8x128xf32>,
      %c0_70 = arith.constant 0 : index
      %c0_71 = arith.constant 0 : index
      %c0_72 = arith.constant 0 : index
      %97 = vector.load %arg4[%c0_70, %c0_71, %c0_72] : memref<8x16x128xf32, #tpu.memory_space<vmem>>, vector<8x16x128xf32>
      %98 = vector.shape_cast %95 : vector<8x128xf32> to vector<8x1x128xf32>
      %99 = vector.broadcast %98 : vector<8x1x128xf32> to vector<8x16x128xf32>
      %100 = arith.mulf %99, %97 : vector<8x16x128xf32>
      %cst_73 = arith.constant dense<0.000000e+00> : vector<8x16xf32>
      %101 = vector.multi_reduction <add>, %100, %cst_73 [2] : vector<8x16x128xf32> to vector<8x16xf32>
      %c0_74 = arith.constant 0 : index
      %c0_75 = arith.constant 0 : index
      %102 = vector.load %arg5[%c0_74, %c0_75] : memref<1x16xf32, #tpu.memory_space<vmem>>, vector<1x16xf32>
      %103 = vector.broadcast %102 : vector<1x16xf32> to vector<8x16xf32>
      %104 = arith.addf %101, %103 : vector<8x16xf32>
      %cst_76 = arith.constant dense<0xFF800000> : vector<8xf32>
      %105 = vector.multi_reduction <maximumf>, %104, %cst_76 [1] : vector<8x16xf32> to vector<8xf32>
      %106 = vector.shape_cast %105 : vector<8xf32> to vector<8x1xf32>
      %107 = vector.broadcast %106 : vector<8x1xf32> to vector<8x16xf32>
      %108 = arith.subf %104, %107 : vector<8x16xf32>
      %109 = math.exp %108 : vector<8x16xf32>
      %cst_77 = arith.constant dense<0.000000e+00> : vector<8xf32>
      %110 = vector.multi_reduction <add>, %109, %cst_77 [1] : vector<8x16xf32> to vector<8xf32>
      %111 = vector.shape_cast %110 : vector<8xf32> to vector<8x1xf32>
      %112 = tpu.reciprocal %111 {approx = true} : vector<8x1xf32> -> vector<8x1xf32>
      %113 = vector.broadcast %112 : vector<8x1xf32> to vector<8x16xf32>
      %114 = arith.mulf %109, %113 : vector<8x16xf32>
      %115 = vector.shape_cast %114 : vector<8x16xf32> to vector<8x1x16xf32>
      "tpu.trace_start"() <{level = 10 : i32, message = "bql,blh->bqh"}> : () -> ()
      %cst_78 = arith.constant dense<0.000000e+00> : vector<8x1x128xf32>
      %116 = tpu.matmul %115, %97, %cst_78 {dimension_numbers = #tpu.dot_dimension_numbers<[2], [1], [1], [2], [0, 0, 0, 1, 1, 2], [0], [0]>} : vector<8x1x16xf32>, vector<8x16x128xf32>, vector<8x1x128xf32> -> vector<8x1x128xf32>
      "tpu.trace_stop"() : () -> ()
      %117 = vector.shape_cast %116 : vector<8x1x128xf32> to vector<8x128xf32>
      %118 = arith.truncf %95 : vector<8x128xf32> to vector<8x128xbf16>
      %c0_79 = arith.constant 0 : index
      %c0_80 = arith.constant 0 : index
      %119 = vector.load %arg10[%c0_79, %c0_80] : memref<128x128xbf16, #tpu.memory_space<vmem>>, vector<128x128xbf16>
      %cst_81 = arith.constant dense<0.000000e+00> : vector<8x128xf32>
      %120 = tpu.matmul %118, %119, %cst_81 {dimension_numbers = #tpu.dot_dimension_numbers<[1], [0], [0], [1], [0, 0, 1, 1], [], []>} : vector<8x128xbf16>, vector<128x128xbf16>, vector<8x128xf32> -> vector<8x128xf32>
      %121 = arith.truncf %117 : vector<8x128xf32> to vector<8x128xbf16>
      %c0_82 = arith.constant 0 : index
      %c0_83 = arith.constant 0 : index
      %122 = vector.load %arg11[%c0_82, %c0_83] : memref<128x128xbf16, #tpu.memory_space<vmem>>, vector<128x128xbf16>
      %cst_84 = arith.constant dense<0.000000e+00> : vector<8x128xf32>
      %123 = tpu.matmul %121, %122, %cst_84 {dimension_numbers = #tpu.dot_dimension_numbers<[1], [0], [0], [1], [0, 0, 1, 1], [], []>} : vector<8x128xbf16>, vector<128x128xbf16>, vector<8x128xf32> -> vector<8x128xf32>
      %124 = arith.addf %120, %123 : vector<8x128xf32>
      %c0_85 = arith.constant 0 : index
      %c0_86 = arith.constant 0 : index
      %125 = vector.load %arg12[%c0_85, %c0_86] : memref<1x128xf32, #tpu.memory_space<vmem>>, vector<1x128xf32>
      %126 = vector.broadcast %125 : vector<1x128xf32> to vector<8x128xf32>
      %127 = arith.addf %124, %126 : vector<8x128xf32>
      %128 = math.tanh %127 : vector<8x128xf32>
      %129 = arith.truncf %128 : vector<8x128xf32> to vector<8x128xbf16>
      %c0_87 = arith.constant 0 : index
      %c0_88 = arith.constant 0 : index
      %130 = vector.load %arg18[%c0_87, %c0_88] : memref<8x128xbf16, #tpu.memory_space<vmem>>, vector<8x128xbf16>
      tpu.vector_store %arg18[%c0_87, %c0_88], %129 {strides = array<i32>} : memref<8x128xbf16, #tpu.memory_space<vmem>>, vector<8x128xbf16>,
    } else {
    }
    %c128_i32 = arith.constant 128 : i32
    %3 = arith.muli %arg0, %c128_i32 : i32
    %4 = tpu.assume_multiple %3, 128 : i32
    %c0 = arith.constant 0 : index
    %c0_1 = arith.constant 0 : index
    %5 = vector.load %arg18[%c0, %c0_1] : memref<8x128xbf16, #tpu.memory_space<vmem>>, vector<8x128xbf16>
    %c0_2 = arith.constant 0 : index
    %c0_3 = arith.constant 0 : index
    %6 = vector.load %arg13[%c0_2, %c0_3] : memref<128x128xbf16, #tpu.memory_space<vmem>>, vector<128x128xbf16>
    %cst = arith.constant dense<0.000000e+00> : vector<8x128xf32>
    %7 = tpu.matmul %5, %6, %cst {dimension_numbers = #tpu.dot_dimension_numbers<[1], [0], [0], [1], [0, 0, 1, 1], [], []>} : vector<8x128xbf16>, vector<128x128xbf16>, vector<8x128xf32> -> vector<8x128xf32>
    %c0_4 = arith.constant 0 : index
    %c0_5 = arith.constant 0 : index
    %8 = vector.load %arg14[%c0_4, %c0_5] : memref<1x128xf32, #tpu.memory_space<vmem>>, vector<1x128xf32>
    %9 = vector.broadcast %8 : vector<1x128xf32> to vector<8x128xf32>
    %10 = arith.addf %7, %9 : vector<8x128xf32>
    %c0_6 = arith.constant 0 : index
    %11 = arith.index_cast %4 : i32 to index
    %12 = vector.load %arg19[%c0_6, %11] : memref<8x128xf32, #tpu.memory_space<vmem>>, vector<8x128xf32>
    tpu.vector_store %arg19[%c0_6, %11], %10 {strides = array<i32>} : memref<8x128xf32, #tpu.memory_space<vmem>>, vector<8x128xf32>,
    %c0_i32_7 = arith.constant 0 : i32
    %13 = arith.cmpi eq, %arg0, %c0_i32_7 : i32
    %14 = arith.extui %13 : i1 to i32
    %c0_i32_8 = arith.constant 0 : i32
    %15 = arith.cmpi ne, %14, %c0_i32_8 : i32
    scf.if %15 {
      %c0_9 = arith.constant 0 : index
      %c0_10 = arith.constant 0 : index
      %16 = vector.load %arg19[%c0_9, %c0_10] : memref<8x128xf32, #tpu.memory_space<vmem>>, vector<8x128xf32>
      %cst_11 = arith.constant dense<0xFF800000> : vector<8xf32>
      %17 = vector.multi_reduction <maximumf>, %16, %cst_11 [1] : vector<8x128xf32> to vector<8xf32>
      %18 = vector.shape_cast %17 : vector<8xf32> to vector<8x1xf32>
      %19 = vector.broadcast %18 : vector<8x1xf32> to vector<8x128xf32>
      %20 = arith.subf %16, %19 : vector<8x128xf32>
      %21 = math.exp %20 : vector<8x128xf32>
      %cst_12 = arith.constant dense<0.000000e+00> : vector<8xf32>
      %22 = vector.multi_reduction <add>, %21, %cst_12 [1] : vector<8x128xf32> to vector<8xf32>
      %23 = vector.shape_cast %22 : vector<8xf32> to vector<8x1xf32>
      %24 = vector.broadcast %23 : vector<8x1xf32> to vector<8x128xf32>
      %25 = arith.divf %21, %24 : vector<8x128xf32>
      %c0_13 = arith.constant 0 : index
      %c0_14 = arith.constant 0 : index
      %26 = vector.load %arg15[%c0_13, %c0_14] : memref<8x128xf32, #tpu.memory_space<vmem>>, vector<8x128xf32>
      tpu.vector_store %arg15[%c0_13, %c0_14], %25 {strides = array<i32>} : memref<8x128xf32, #tpu.memory_space<vmem>>, vector<8x128xf32>,
    } else {
    }
    return
  }
  func.func @transform_1(%arg0: i32, %arg1: memref<8xi32, #tpu.memory_space<smem>>) -> (i32, i32) {
    %c0_i32 = arith.constant 0 : i32
    %c0_i32_0 = arith.constant 0 : i32
    %c0_i32_1 = arith.constant 0 : i32
    return %c0_i32, %c0_i32_0 : i32, i32
  }
  func.func @transform_2(%arg0: i32, %arg1: memref<8xi32, #tpu.memory_space<smem>>) -> (i32, i32, i32) {
    %c0_i32 = arith.constant 0 : i32
    %c0_i32_0 = arith.constant 0 : i32
    %c0_i32_1 = arith.constant 0 : i32
    %c0_i32_2 = arith.constant 0 : i32
    return %c0_i32, %c0_i32_0, %c0_i32_1 : i32, i32, i32
  }
  func.func @transform_3(%arg0: i32, %arg1: memref<8xi32, #tpu.memory_space<smem>>) -> (i32, i32) {
    %c0_i32 = arith.constant 0 : i32
    %c0_i32_0 = arith.constant 0 : i32
    %c0_i32_1 = arith.constant 0 : i32
    return %c0_i32, %c0_i32_0 : i32, i32
  }
  func.func @transform_4(%arg0: i32, %arg1: memref<8xi32, #tpu.memory_space<smem>>) -> (i32, i32) {
    %c0_i32 = arith.constant 0 : i32
    %c0_i32_0 = arith.constant 0 : i32
    %c0_i32_1 = arith.constant 0 : i32
    return %c0_i32, %c0_i32_0 : i32, i32
  }
  func.func @transform_5(%arg0: i32, %arg1: memref<8xi32, #tpu.memory_space<smem>>) -> (i32, i32) {
    %c0_i32 = arith.constant 0 : i32
    %c0_i32_0 = arith.constant 0 : i32
    %c0_i32_1 = arith.constant 0 : i32
    return %c0_i32, %c0_i32_0 : i32, i32
  }
  func.func @transform_6(%arg0: i32, %arg1: memref<8xi32, #tpu.memory_space<smem>>) -> (i32, i32) {
    %c0_i32 = arith.constant 0 : i32
    %c0_i32_0 = arith.constant 0 : i32
    %c0_i32_1 = arith.constant 0 : i32
    return %c0_i32, %c0_i32_0 : i32, i32
  }
  func.func @transform_7(%arg0: i32, %arg1: memref<8xi32, #tpu.memory_space<smem>>) -> (i32, i32) {
    %c0_i32 = arith.constant 0 : i32
    %c0_i32_0 = arith.constant 0 : i32
    %c0_i32_1 = arith.constant 0 : i32
    return %c0_i32, %c0_i32_0 : i32, i32
  }
  func.func @transform_8(%arg0: i32, %arg1: memref<8xi32, #tpu.memory_space<smem>>) -> (i32, i32) {
    %c0_i32 = arith.constant 0 : i32
    %c0_i32_0 = arith.constant 0 : i32
    %c0_i32_1 = arith.constant 0 : i32
    return %c0_i32, %c0_i32_0 : i32, i32
  }
  func.func @transform_9(%arg0: i32, %arg1: memref<8xi32, #tpu.memory_space<smem>>) -> (i32, i32) {
    %c0_i32 = arith.constant 0 : i32
    %c0_i32_0 = arith.constant 0 : i32
    %c0_i32_1 = arith.constant 0 : i32
    return %c0_i32, %c0_i32_0 : i32, i32
  }
  func.func @transform_10(%arg0: i32, %arg1: memref<8xi32, #tpu.memory_space<smem>>) -> (i32, i32) {
    %c0_i32 = arith.constant 0 : i32
    %c0_i32_0 = arith.constant 0 : i32
    %c0_i32_1 = arith.constant 0 : i32
    return %c0_i32, %c0_i32_0 : i32, i32
  }
  func.func @transform_11(%arg0: i32, %arg1: memref<8xi32, #tpu.memory_space<smem>>) -> (i32, i32) {
    %c0_i32 = arith.constant 0 : i32
    %c0_i32_0 = arith.constant 0 : i32
    return %c0_i32, %arg0 : i32, i32
  }
  func.func @transform_12(%arg0: i32, %arg1: memref<8xi32, #tpu.memory_space<smem>>) -> (i32, i32) {
    %c0_i32 = arith.constant 0 : i32
    %c0_i32_0 = arith.constant 0 : i32
    return %c0_i32, %arg0 : i32, i32
  }
  func.func @transform_13(%arg0: i32, %arg1: memref<8xi32, #tpu.memory_space<smem>>) -> (i32, i32) {
    %c0_i32 = arith.constant 0 : i32
    %c0_i32_0 = arith.constant 0 : i32
    %c0_i32_1 = arith.constant 0 : i32
    return %c0_i32, %c0_i32_0 : i32, i32
  }
  func.func @transform_14(%arg0: i32, %arg1: memref<8xi32, #tpu.memory_space<smem>>) -> (i32, i32) {
    %c0_i32 = arith.constant 0 : i32
    %c0_i32_0 = arith.constant 0 : i32
    %c0_i32_1 = arith.constant 0 : i32
    return %c0_i32, %c0_i32_0 : i32, i32
  }
}

</mosaic_0001>

<bundles_post_ra>
// kernel: luong_attn_decoder_step.1
= control target key start
LH: loop header
LB: loop body
LE: loop exit
PB: predicated region body
PF: predicated region fallthrough
CT: control target
= control target key end

     0   :  { %s2777_s21 = smov [#allocation7]   ;;  %s3341_s0 = inlined_call_operand.vmem [shape: s32[8], index: 0, kind: input, shape index: {}]   ;;  %s3342_s1 = inlined_call_operand.hbm [shape: f32[50,128], index: 1, kind: input, shape index: {}]   ;;  %s3343_s2 = inlined_call_operand.vmem [shape: f32[8,128], index: 2, kind: input, shape index: {}]   ;;  %s3344_s3 = inlined_call_operand.hbm [shape: f32[8,16,128], index: 3, kind: input, shape index: {}]   ;;  %s3345_s4 = inlined_call_operand.vmem [shape: f32[1,16], index: 4, kind: input, shape index: {}]   ;;  %s3346_s5 = inlined_call_operand.hbm [shape: bf16[128,384], index: 5, kind: input, shape index: {}]   ;;  %s3347_s6 = inlined_call_operand.hbm [shape: bf16[128,384], index: 6, kind: input, shape index: {}]   ;;  %s3348_s7 = inlined_call_operand.vmem [shape: f32[1,384], index: 7, kind: input, shape index: {}]   ;;  %s3349_s8 = inlined_call_operand.hbm [shape: f32[1,384], index: 8, kind: input, shape index: {}]   ;;  %s3350_s9 = inlined_call_operand.hbm [shape: bf16[128,128], index: 9, kind: input, shape index: {}]   ;;  %s3351_s10 = inlined_call_operand.hbm [shape: bf16[128,128], index: 10, kind: input, shape index: {}]   ;;  %s3352_s11 = inlined_call_operand.hbm [shape: f32[1,128], index: 11, kind: input, shape index: {}]   ;;  %s3353_s12 = inlined_call_operand.hbm [shape: bf16[128,128], index: 12, kind: input, shape index: {}]   ;;  %s3354_s13 = inlined_call_operand.vmem [shape: f32[1,128], index: 13, kind: input, shape index: {}]   ;;  %s3355_s14 = inlined_call_operand.hbm [shape: f32[8,128], index: 14, kind: output, shape index: {0}]   ;;  %s3356_s15 = inlined_call_operand.hbm [shape: f32[8,128], index: 15, kind: output, shape index: {1}]  }
   0x1   :  { %s22_s20 = sshll.u32 %s3341_s0, 4  ;;  %s23_s20 = int_to_ptr.vmem [resolvable:$true] %s22_s20 }
   0x2   :  { %25 = dma.vmem_to_smem %s23_s20, 16, %s2777_s21, [#allocation6] }
   0x3   :  { %2759 = dma.done.wait [#allocation6], 16 }
   0x4   :  { %2760 = vsyncadd [#allocation6], 4294967280 }
   0x5   :  { %28 = sfence }
   0x6   :  { %29 = vsyncpa [#allocation9], 0 }
   0x7   :  { %30 = vsyncpa [#allocation12], 0 }
   0x8   :  { %31 = vsyncpa [#allocation15], 0 }
   0x9   :  { %32 = vsyncpa [#allocation18], 0 }
   0xa   :  { %33 = vsyncpa [#allocation21], 0 }
   0xb   :  { %34 = vsyncpa [#allocation10], 0  ;;  %s57_s24 = sshll.u32 %s3346_s5, 4  ;;  %s58_s24 = int_to_ptr.hbm [resolvable:$true] %s57_s24 }
   0xc   :  { %35 = vsyncpa [#allocation24], 0  ;;  %s2778_s25 = smov [#allocation11]   ;;  %s86_s28 = sshll.u32 %s3349_s8, 4  ;;  %s87_s28 = int_to_ptr.hbm [resolvable:$true] %s86_s28 }
   0xd   :  { %s59_s0 = sshll.u32 %s2778_s25, 4  ;;  %s2779_s29 = smov 192   ;;  %s60_s0 = int_to_ptr.vmem [resolvable:$true] %s59_s0 }
   0xe   :  { %s2780_s30 = smov 12   ;;  %s2781_s16 = smov [#allocation14]  }
   0xf   :  { %65 = dma.hbm_to_vmem [thread:$0]  %s58_s24, 3072, %s60_s0, [#allocation12], %s2779_s29, %s2779_s29, %s2780_s30  }
  0x10   :  { %s88_s17 = sshll.u32 %s2781_s16, 4  ;;  %s109_s19 = sshll.u32 %s3351_s10, 4  ;;  %s89_s17 = int_to_ptr.vmem [resolvable:$true] %s88_s17  ;;  %s110_s19 = int_to_ptr.hbm [resolvable:$true] %s109_s19 }
  0x11   :  { %91 = dma.hbm_to_vmem [thread:$0]  %s87_s28, 48, %s89_s17, [#allocation15]  }
  0x12   :  { %s2782_s20 = smov [#allocation17]   ;;  %s42_s23 = sshll.u32 %s3344_s3, 4  ;;  %s43_s23 = int_to_ptr.hbm [resolvable:$true] %s42_s23 }
  0x13   :  { %s111_s21 = sshll.u32 %s2782_s20, 4  ;;  %s2783_s25 = smov 64   ;;  %s112_s21 = int_to_ptr.vmem [resolvable:$true] %s111_s21 }
  0x14   :  { %s2784_s26 = smov 4   ;;  %s2785_s24 = smov [#allocation8]  }
  0x15   :  { %117 = dma.hbm_to_vmem [thread:$0]  %s110_s19, 1024, %s112_s21, [#allocation18], %s2783_s25, %s2783_s25, %s2784_s26  }
  0x16   :  { %s44_s0 = sshll.u32 %s2785_s24, 4  ;;  %s2786_s27 = smov 128   ;;  %s45_s0 = int_to_ptr.vmem [resolvable:$true] %s44_s0 }
  0x17   :  { %s2787_s10 = smov 8   ;;  %s70_s17 = sshll.u32 %s3347_s6, 4  ;;  %s71_s17 = int_to_ptr.hbm [resolvable:$true] %s70_s17 }
  0x18   :  { %50 = dma.hbm_to_vmem [thread:$0]  %s43_s23, 2048, %s45_s0, [#allocation9], %s2786_s27, %s2786_s27, %s2787_s10  }
  0x19   :  { %s2788_s5 = smov [#allocation13]   ;;  %s96_s8 = sshll.u32 %s3350_s9, 4  ;;  %s97_s8 = int_to_ptr.hbm [resolvable:$true] %s96_s8 }
  0x1a   :  { %s72_s3 = sshll.u32 %s2788_s5, 4  ;;  %s2789_s19 = smov [#allocation16]   ;;  %s73_s3 = int_to_ptr.vmem [resolvable:$true] %s72_s3 }
  0x1b   :  { %78 = dma.hbm_to_vmem [thread:$0]  %s71_s17, 3072, %s73_s3, [#allocation12], %s2779_s29, %s2779_s29, %s2780_s30  }
  0x1c   :  { %s98_s21 = sshll.u32 %s2789_s19, 4  ;;  %s123_s24 = sshll.u32 %s3352_s11, 4  ;;  %s99_s21 = int_to_ptr.vmem [resolvable:$true] %s98_s21  ;;  %s124_s24 = int_to_ptr.hbm [resolvable:$true] %s123_s24 }
  0x1d   :  { %104 = dma.hbm_to_vmem [thread:$0]  %s97_s8, 1024, %s99_s21, [#allocation15], %s2783_s25, %s2783_s25, %s2784_s26  }
  0x1e   :  { %s133_s9 = sshll.u32 %s3353_s12, 4  ;;  %s2790_s27 = smov [#allocation19]   ;;  %s134_s9 = int_to_ptr.hbm [resolvable:$true] %s133_s9 }
  0x1f   :  { %s125_s10 = sshll.u32 %s2790_s27, 4  ;;  %s2791_s29 = smov [#allocation20]   ;;  %s126_s10 = int_to_ptr.vmem [resolvable:$true] %s125_s10 }
  0x20   :  { %128 = dma.hbm_to_vmem [thread:$0]  %s124_s24, 16, %s126_s10, [#allocation18]  }
  0x21   :  { %s135_s30 = sshll.u32 %s2791_s29, 4  ;;  %s136_s30 = int_to_ptr.vmem [resolvable:$true] %s135_s30 }
  0x22   :  { %141 = dma.hbm_to_vmem [thread:$0]  %s134_s9, 1024, %s136_s30, [#allocation21], %s2783_s25, %s2783_s25, %s2784_s26  }
  0x23   :  { %2761 = dma.done.wait [#allocation9], 2048  }
  0x24   :  { %2762 = vsyncadd [#allocation9], 4294965248 }
  0x25   :  { %2763 = dma.done.wait [#allocation12], 6144  }
  0x26   :  { %2764 = vsyncadd [#allocation12], 4294961152 }
  0x27   :  { %2765 = dma.done.wait [#allocation15], 1072  }
  0x28   :  { %2766 = vsyncadd [#allocation15], 4294966224 }
  0x29   :  { %2767 = dma.done.wait [#allocation18], 1040  }
  0x2a   :  { %2768 = vsyncadd [#allocation18], 4294966256 }
  0x2b   :  { %2769 = dma.done.wait [#allocation21], 1024  }
  0x2c   :  { %2770 = vsyncadd [#allocation21], 4294966272  ;;  %v1946_v0 = vld [vmem:[#allocation13 + $0xa8] sm:$0xf]  ;;  %v2181_v1 = vld [vmem:[#allocation13 + $0xb0] sm:$0xf0] }
  0x2d   :  { %v2180_v2 = vld [vmem:[#allocation13 + $0xac] sm:$0xf]  ;;  %v1947_v3 = vor.u32 %v2181_v1, %v1946_v0  ;;  %v1948_v4 = vld [vmem:[#allocation13 + $0xb4] sm:$0xf0]  ;;  %v1954_v5 = vld [vmem:[#allocation13 + $0xb0] sm:$0xf] }
  0x2e   :  { %v2182_v6 = vld [vmem:[#allocation13 + $0xb8] sm:$0xf0]  ;;  %v1951_v7 = vor.u32 %v2180_v2, %v1948_v4  ;;  %v1934_v9 = vld [vmem:[#allocation13 + $0x90] sm:$0xf]  ;;  %v2177_v11 = vld [vmem:[#allocation13 + $0x94] sm:$0xf] }
  0x2f   :  { %v1955_v8 = vor.u32 %v2182_v6, %v1954_v5  ;;  %v2178_v10 = vld [vmem:[#allocation13 + $0x98] sm:$0xf0]  ;;  %477 = vmatpush.bf16.msra.mxu0 %v1947_v3  ;;  %v1936_v13 = vld [vmem:[#allocation13 + $0x9c] sm:$0xf0]  ;;  %v1942_v14 = vld [vmem:[#allocation13 + $0x98] sm:$0xf] }
  0x30   :  { %v1935_v12 = vor.u32 %v2178_v10, %v1934_v9  ;;  %v2179_v15 = vld [vmem:[#allocation13 + $0xa0] sm:$0xf0]  ;;  %490 = vmatpush.bf16.msra.mxu1 %v1951_v7  ;;  %v1939_v16 = vor.u32 %v2177_v11, %v1936_v13  ;;  %v1922_v18 = vld [vmem:[#allocation13 + $0x78] sm:$0xf]  ;;  %v2174_v20 = vld [vmem:[#allocation13 + $0x7c] sm:$0xf] }
  0x31   :  { %503 = vmatpush.bf16.msra.mxu3 %v1955_v8  ;;  %v1943_v17 = vor.u32 %v2179_v15, %v1942_v14  ;;  %v2175_v19 = vld [vmem:[#allocation13 + $0x80] sm:$0xf0]  ;;  %v1924_v21 = vld [vmem:[#allocation13 + $0x84] sm:$0xf0]  ;;  %v1930_v22 = vld [vmem:[#allocation13 + $0x80] sm:$0xf] }
  0x32   :  { %v2176_v23 = vld [vmem:[#allocation13 + $0x88] sm:$0xf0]  ;;  %v1923_v24 = vor.u32 %v2175_v19, %v1922_v18  ;;  %v1927_v25 = vor.u32 %v2174_v20, %v1924_v21  ;;  %v1910_v27 = vld [vmem:[#allocation13 + $0x60] sm:$0xf]  ;;  %v2171_v29 = vld [vmem:[#allocation13 + $0x64] sm:$0xf] }
  0x33   :  { %478 = vmatpush.bf16.msra.mxu0 %v1935_v12  ;;  %v1931_v26 = vor.u32 %v2176_v23, %v1930_v22  ;;  %v2172_v28 = vld [vmem:[#allocation13 + $0x68] sm:$0xf0]  ;;  %v1912_v30 = vld [vmem:[#allocation13 + $0x6c] sm:$0xf0]  ;;  %v1918_v31 = vld [vmem:[#allocation13 + $0x68] sm:$0xf] }
  0x34   :  { %491 = vmatpush.bf16.msra.mxu1 %v1939_v16  ;;  %v2173_v32 = vld [vmem:[#allocation13 + $0x70] sm:$0xf0]  ;;  %v1911_v33 = vor.u32 %v2172_v28, %v1910_v27  ;;  %v1915_v34 = vor.u32 %v2171_v29, %v1912_v30  ;;  %v1898_v36 = vld [vmem:[#allocation13 + $0x48] sm:$0xf]  ;;  %v2168_v38 = vld [vmem:[#allocation13 + $0x4c] sm:$0xf] }
  0x35   :  { %504 = vmatpush.bf16.msra.mxu3 %v1943_v17  ;;  %v1919_v35 = vor.u32 %v2173_v32, %v1918_v31  ;;  %v2169_v37 = vld [vmem:[#allocation13 + $0x50] sm:$0xf0]  ;;  %v1900_v39 = vld [vmem:[#allocation13 + $0x54] sm:$0xf0]  ;;  %v1906_v40 = vld [vmem:[#allocation13 + $0x50] sm:$0xf] }
  0x36   :  { %v2170_v41 = vld [vmem:[#allocation13 + $0x58] sm:$0xf0]  ;;  %v1899_v42 = vor.u32 %v2169_v37, %v1898_v36  ;;  %v1903_v43 = vor.u32 %v2168_v38, %v1900_v39  ;;  %v1886_v45 = vld [vmem:[#allocation13 + $0x30] sm:$0xf]  ;;  %v2165_v47 = vld [vmem:[#allocation13 + $0x34] sm:$0xf] }
  0x37   :  { %479 = vmatpush.bf16.msra.mxu0 %v1923_v24  ;;  %v1907_v44 = vor.u32 %v2170_v41, %v1906_v40  ;;  %v2166_v46 = vld [vmem:[#allocation13 + $0x38] sm:$0xf0]  ;;  %v1888_v48 = vld [vmem:[#allocation13 + $0x3c] sm:$0xf0]  ;;  %v1894_v49 = vld [vmem:[#allocation13 + $0x38] sm:$0xf] }
  0x38   :  { %492 = vmatpush.bf16.msra.mxu1 %v1927_v25  ;;  %v2167_v50 = vld [vmem:[#allocation13 + $0x40] sm:$0xf0]  ;;  %v1887_v51 = vor.u32 %v2166_v46, %v1886_v45  ;;  %v1891_v52 = vor.u32 %v2165_v47, %v1888_v48  ;;  %v1874_v54 = vld [vmem:[#allocation13 + $0x18] sm:$0xf]  ;;  %v2162_v56 = vld [vmem:[#allocation13 + $0x1c] sm:$0xf] }
  0x39   :  { %505 = vmatpush.bf16.msra.mxu3 %v1931_v26  ;;  %v1895_v53 = vor.u32 %v2167_v50, %v1894_v49  ;;  %v2163_v55 = vld [vmem:[#allocation13 + $0x20] sm:$0xf0]  ;;  %v1876_v57 = vld [vmem:[#allocation13 + $0x24] sm:$0xf0]  ;;  %v1882_v58 = vld [vmem:[#allocation13 + $0x20] sm:$0xf] }
  0x3a   :  { %v2164_v59 = vld [vmem:[#allocation13 + $0x28] sm:$0xf0]  ;;  %v1875_v60 = vor.u32 %v2163_v55, %v1874_v54  ;;  %v1879_v61 = vor.u32 %v2162_v56, %v1876_v57  ;;  %v1862_v63 = vld [vmem:[#allocation13] sm:$0xf]  ;;  %v2159_v1 = vld [vmem:[#allocation13 + $0x4] sm:$0xf] }
  0x3b   :  { %480 = vmatpush.bf16.msra.mxu0 %v1911_v33  ;;  %v1883_v62 = vor.u32 %v2164_v59, %v1882_v58  ;;  %v2160_v0 = vld [vmem:[#allocation13 + $0x8] sm:$0xf0]  ;;  %v1864_v2 = vld [vmem:[#allocation13 + $0xc] sm:$0xf0]  ;;  %v1870_v3 = vld [vmem:[#allocation13 + $0x8] sm:$0xf] }
  0x3c   :  { %493 = vmatpush.bf16.msra.mxu1 %v1915_v34  ;;  %v2161_v4 = vld [vmem:[#allocation13 + $0x10] sm:$0xf0]  ;;  %v1863_v5 = vor.u32 %v2160_v0, %v1862_v63  ;;  %v1867_v7 = vor.u32 %v2159_v1, %v1864_v2  ;;  %s180_s25 = sld [smem:[#allocation7]]  ;;  %s2792_s8 = smov [#allocation2]  }
  0x3d   :  { %506 = vmatpush.bf16.msra.mxu3 %v1919_v35  ;;  %v2928_v6 = vld [vmem:[%s3343_s2] sm:$0xff]  ;;  %v1871_v8 = vor.u32 %v2161_v4, %v1870_v3  ;;  %s1853_s26 = sld [smem:[#allocation7 + $0x1]]  ;;  %s191_s19 = sshll.u32 %s2792_s8, 4  ;;  %s192_s19 = int_to_ptr.vmem [resolvable:$true] %s191_s19 }
  0x3e   :  { %v308_v9 = vpack.c.bf16 %v2928_v6, %v2928_v6  ;;  %s2932_s28 = sld [smem:[#allocation7 + $0x2]]  ;;  %s2946_s6 = scalar_lea.hbm %s3342_s1, 56 }
  0x3f   :  { %481 = vmatpush.bf16.msra.mxu0 %v1899_v42  ;;  %s2934_s16 = sld [smem:[#allocation7 + $0x3]] }
  0x40   :  { %494 = vmatpush.bf16.msra.mxu1 %v1903_v43  ;;  %s2936_s17 = sld [smem:[#allocation7 + $0x4]] }
  0x41   :  { %507 = vmatpush.bf16.msra.mxu3 %v1907_v44  ;;  %s2938_s2 = sld [smem:[#allocation7 + $0x5]] }
  0x42   :  { %s181_s18 = scalar_lea.hbm %s3342_s1, %s180_s25 }
  0x43   :  { %482 = vmatpush.bf16.msra.mxu0 %v1887_v51  ;;  %s189_s20 = sshll.u32 %s181_s18, 4  ;;  %s190_s20 = int_to_ptr.hbm [resolvable:$true] %s189_s20 }
  0x44   :  { %495 = vmatpush.bf16.msra.mxu1 %v1891_v52  ;;  %s2519_s21 = sshra.s32 %s190_s20, 4  ;;  %s2520_s21 = int_to_ptr.hbm [resolvable:$true] %s2519_s21 }
  0x45   :  { %508 = vmatpush.bf16.msra.mxu3 %v1895_v53  ;;  %s2521_s22 = scalar_lea.hbm %s2520_s21, 1  ;;  %p2524_p1 = scmp.lt.s32.totalorder %s2520_s21, %s3342_s1 }
  0x46   :  { %p2522_p0 = scmp.ne.s32.totalorder %s2520_s21, %s2521_s22  ;;  %p2525_p2 = scmp.lt.s32.totalorder %s2946_s6, %s2521_s22 }
  0x47   :  { %483 = vmatpush.bf16.msra.mxu0 %v1875_v60 }
  0x48   :  { %496 = vmatpush.bf16.msra.mxu1 %v1879_v61  ;;  %p2526_p3 = por %p2525_p2, %p2524_p1 }
  0x49   :  { %509 = vmatpush.bf16.msra.mxu3 %v1883_v62 }
  0x4a   :  { %p2527_p4 = pnand %p2526_p3, %p2522_p0 }
  0x4b   :  { %484 = vmatpush.bf16.msra.mxu0 %v1863_v5 }
  0x4c   :  { %497 = vmatpush.bf16.msra.mxu1 %v1867_v7 }
  0x4d   :  { %510 = vmatpush.bf16.msra.mxu3 %v1871_v8 }
  0x4e   :  { %485 = vmatmul.bf16.vlgmr.msra.gmra.mxu0 %v308_v9 }
  0x4f   :  { %498 = vmatmul.bf16.vlgmr.msra.gmra.mxu1 %v308_v9 }
  0x50   :  { %511 = vmatmul.bf16.vlgmr.msra.gmra.mxu3 %v308_v9 }
  0x51   :  { %2530 = shalt.err (!%p2527_p4)  }
  0x52   :  { %194 = dma.hbm_to_vmem [thread:$0]  %s190_s20, 16, %s192_s19, [#allocation5] }
  0x53   :  { %s196_s29 = scalar_lea.hbm %s3342_s1, %s1853_s26  ;;  %s2793_s11 = smov [#allocation2 + $0x1]  }
  0x54   :  { %s205_s30 = sshll.u32 %s196_s29, 4  ;;  %s207_s12 = sshll.u32 %s2793_s11, 4  ;;  %s206_s30 = int_to_ptr.hbm [resolvable:$true] %s205_s30  ;;  %s208_s12 = int_to_ptr.vmem [resolvable:$true] %s207_s12 }
  0x55   :  { %s2543_s25 = sshra.s32 %s206_s30, 4  ;;  %s2544_s25 = int_to_ptr.hbm [resolvable:$true] %s2543_s25 }
  0x56   :  { %s2545_s5 = scalar_lea.hbm %s2544_s25, 1  ;;  %p2548_p6 = scmp.lt.s32.totalorder %s2544_s25, %s3342_s1 }
  0x57   :  { %p2546_p5 = scmp.ne.s32.totalorder %s2544_s25, %s2545_s5  ;;  %p2549_p7 = scmp.lt.s32.totalorder %s2946_s6, %s2545_s5 }
  0x59   :  { %p2550_p8 = por %p2549_p7, %p2548_p6 }
  0x5b   :  { %p2551_p9 = pnand %p2550_p8, %p2546_p5 }
  0x5d   :  { %2554 = shalt.err (!%p2551_p9)  }
  0x5e   :  { %210 = dma.hbm_to_vmem [thread:$0]  %s206_s30, 16, %s208_s12, [#allocation5] }
  0x5f   :  { %s212_s8 = scalar_lea.hbm %s3342_s1, %s2932_s28  ;;  %s2794_s21 = smov [#allocation2 + $0x2]  }
  0x60   :  { %s221_s19 = sshll.u32 %s212_s8, 4  ;;  %s223_s22 = sshll.u32 %s2794_s21, 4  ;;  %s222_s19 = int_to_ptr.hbm [resolvable:$true] %s221_s19  ;;  %s224_s22 = int_to_ptr.vmem [resolvable:$true] %s223_s22 }
  0x61   :  { %s2567_s23 = sshra.s32 %s222_s19, 4  ;;  %s2568_s23 = int_to_ptr.hbm [resolvable:$true] %s2567_s23 }
  0x62   :  { %s2569_s24 = scalar_lea.hbm %s2568_s23, 1  ;;  %p2572_p11 = scmp.lt.s32.totalorder %s2568_s23, %s3342_s1 }
  0x63   :  { %p2570_p10 = scmp.ne.s32.totalorder %s2568_s23, %s2569_s24  ;;  %p2573_p12 = scmp.lt.s32.totalorder %s2946_s6, %s2569_s24 }
  0x65   :  { %p2574_p13 = por %p2573_p12, %p2572_p11 }
  0x67   :  { %p2575_p0 = pnand %p2574_p13, %p2570_p10 }
  0x69   :  { %2578 = shalt.err (!%p2575_p0)  }
  0x6a   :  { %226 = dma.hbm_to_vmem [thread:$0]  %s222_s19, 16, %s224_s22, [#allocation5] }
  0x6b   :  { %s228_s10 = scalar_lea.hbm %s3342_s1, %s2934_s16  ;;  %s2795_s30 = smov [#allocation2 + $0x3]  }
  0x6c   :  { %s237_s29 = sshll.u32 %s228_s10, 4  ;;  %s239_s11 = sshll.u32 %s2795_s30, 4  ;;  %s238_s29 = int_to_ptr.hbm [resolvable:$true] %s237_s29  ;;  %s240_s11 = int_to_ptr.vmem [resolvable:$true] %s239_s11 }
  0x6d   :  { %s2591_s12 = sshra.s32 %s238_s29, 4  ;;  %s2592_s12 = int_to_ptr.hbm [resolvable:$true] %s2591_s12 }
  0x6e   :  { %s2593_s25 = scalar_lea.hbm %s2592_s12, 1  ;;  %p2596_p2 = scmp.lt.s32.totalorder %s2592_s12, %s3342_s1 }
  0x6f   :  { %p2594_p1 = scmp.ne.s32.totalorder %s2592_s12, %s2593_s25  ;;  %p2597_p3 = scmp.lt.s32.totalorder %s2946_s6, %s2593_s25 }
  0x71   :  { %p2598_p4 = por %p2597_p3, %p2596_p2 }
  0x73   :  { %p2599_p5 = pnand %p2598_p4, %p2594_p1 }
  0x75   :  { %2602 = shalt.err (!%p2599_p5)  }
  0x76   :  { %242 = dma.hbm_to_vmem [thread:$0]  %s238_s29, 16, %s240_s11, [#allocation5] }
  0x77   :  { %s244_s26 = scalar_lea.hbm %s3342_s1, %s2936_s17  ;;  %s2796_s8 = smov [#allocation2 + $0x4]  }
  0x78   :  { %s253_s20 = sshll.u32 %s244_s26, 4  ;;  %s255_s19 = sshll.u32 %s2796_s8, 4  ;;  %s254_s20 = int_to_ptr.hbm [resolvable:$true] %s253_s20  ;;  %s256_s19 = int_to_ptr.vmem [resolvable:$true] %s255_s19 }
  0x79   :  { %s2615_s21 = sshra.s32 %s254_s20, 4  ;;  %s2616_s21 = int_to_ptr.hbm [resolvable:$true] %s2615_s21 }
  0x7a   :  { %s2617_s22 = scalar_lea.hbm %s2616_s21, 1  ;;  %p2620_p7 = scmp.lt.s32.totalorder %s2616_s21, %s3342_s1 }
  0x7b   :  { %p2618_p6 = scmp.ne.s32.totalorder %s2616_s21, %s2617_s22  ;;  %p2621_p8 = scmp.lt.s32.totalorder %s2946_s6, %s2617_s22 }
  0x7d   :  { %p2622_p9 = por %p2621_p8, %p2620_p7 }
  0x7f   :  { %p2623_p10 = pnand %p2622_p9, %p2618_p6 }
  0x81   :  { %2626 = shalt.err (!%p2623_p10)  }
  0x82   :  { %258 = dma.hbm_to_vmem [thread:$0]  %s254_s20, 16, %s256_s19, [#allocation5] }
  0x83   :  { %s260_s9 = scalar_lea.hbm %s3342_s1, %s2938_s2  ;;  %s2797_s27 = smov [#allocation2 + $0x5]  }
  0x84   :  { %s269_s28 = sshll.u32 %s260_s9, 4  ;;  %s271_s10 = sshll.u32 %s2797_s27, 4  ;;  %s270_s28 = int_to_ptr.hbm [resolvable:$true] %s269_s28  ;;  %s272_s10 = int_to_ptr.vmem [resolvable:$true] %s271_s10 }
  0x85   :  { %s2639_s29 = sshra.s32 %s270_s28, 4  ;;  %s2640_s29 = int_to_ptr.hbm [resolvable:$true] %s2639_s29 }
  0x86   :  { %s2641_s30 = scalar_lea.hbm %s2640_s29, 1  ;;  %p2644_p12 = scmp.lt.s32.totalorder %s2640_s29, %s3342_s1 }
  0x87   :  { %p2642_p11 = scmp.ne.s32.totalorder %s2640_s29, %s2641_s30  ;;  %p2645_p13 = scmp.lt.s32.totalorder %s2946_s6, %s2641_s30 }
  0x89   :  { %p2646_p0 = por %p2645_p13, %p2644_p12 }
  0x8b   :  { %p2647_p1 = pnand %p2646_p0, %p2642_p11 }
  0x8d   :  { %2650 = shalt.err (!%p2647_p1)  }
  0x8e   :  { %274 = dma.hbm_to_vmem [thread:$0]  %s270_s28, 16, %s272_s10, [#allocation5] }
  0x8f   :  { %s1858_s25 = sld [smem:[#allocation7 + $0x6]]  ;;  %s2798_s5 = smov [#allocation2 + $0x6]  }
  0x90   :  { %s1859_s2 = sld [smem:[#allocation7 + $0x7]]  ;;  %s287_s3 = sshll.u32 %s2798_s5, 4  ;;  %s288_s3 = int_to_ptr.vmem [resolvable:$true] %s287_s3 }
  0x91   :  { %s2799_s16 = smov [#allocation2 + $0x7]  }
  0x92   :  { %s2991_s18 = sshll.u32 %s2799_s16, 4  ;;  %s304_s18 = int_to_ptr.vmem [resolvable:$true] %s2991_s18 }
  0x95   :  { %s276_s8 = scalar_lea.hbm %s3342_s1, %s1858_s25 }
  0x96   :  { %s285_s19 = sshll.u32 %s276_s8, 4  ;;  %s292_s23 = scalar_lea.hbm %s3342_s1, %s1859_s2  ;;  %s286_s19 = int_to_ptr.hbm [resolvable:$true] %s285_s19 }
  0x97   :  { %s301_s24 = sshll.u32 %s292_s23, 4  ;;  %s2663_s17 = sshra.s32 %s286_s19, 4  ;;  %s2664_s17 = int_to_ptr.hbm [resolvable:$true] %s2663_s17  ;;  %s302_s24 = int_to_ptr.hbm [resolvable:$true] %s301_s24 }
  0x98   :  { %s2665_s0 = scalar_lea.hbm %s2664_s17, 1  ;;  %p2668_p3 = scmp.lt.s32.totalorder %s2664_s17, %s3342_s1 }
  0x99   :  { %p2666_p2 = scmp.ne.s32.totalorder %s2664_s17, %s2665_s0  ;;  %p2669_p4 = scmp.lt.s32.totalorder %s2946_s6, %s2665_s0 }
  0x9b   :  { %p2670_p5 = por %p2669_p4, %p2668_p3 }
  0x9d   :  { %p2671_p6 = pnand %p2670_p5, %p2666_p2 }
  0x9f   :  { %2674 = shalt.err (!%p2671_p6)  }
  0xa0   :  { %290 = dma.hbm_to_vmem [thread:$0]  %s286_s19, 16, %s288_s3, [#allocation5] }
  0xa1   :  { %s2687_s27 = sshra.s32 %s302_s24, 4  ;;  %s2688_s27 = int_to_ptr.hbm [resolvable:$true] %s2687_s27 }
  0xa2   :  { %s2689_s10 = scalar_lea.hbm %s2688_s27, 1  ;;  %p2692_p8 = scmp.lt.s32.totalorder %s2688_s27, %s3342_s1 }
  0xa3   :  { %p2690_p7 = scmp.ne.s32.totalorder %s2688_s27, %s2689_s10  ;;  %p2693_p9 = scmp.lt.s32.totalorder %s2946_s6, %s2689_s10 }
  0xa5   :  { %p2694_p10 = por %p2693_p9, %p2692_p8 }
  0xa7   :  { %p2695_p11 = pnand %p2694_p10, %p2690_p7 }
  0xa9   :  { %2698 = shalt.err (!%p2695_p11)  }
  0xaa   :  { %306 = dma.hbm_to_vmem [thread:$0]  %s302_s24, 16, %s304_s18, [#allocation5]  ;;  %v341_v10 = vld [vmem:[#allocation14] sm:$0x7] }
  0xab   :  { %v343_v11 = vperm.slane %v341_v10, 0  ;;  %v344_v12 = vperm.slane %v341_v10, 1  ;;  %v345_v17 = vperm.slane %v341_v10, 2 }
  0xcb   :  { %v486_v13 = vpop.f32.mrf.mxu0 }
  0xcc   :  { %v3008_v14 = vadd.f32 %v486_v13, %v343_v11  ;;  %v499_v15 = vpop.f32.mrf.mxu1 }
  0xcd   :  { %v3010_v16 = vadd.f32 %v499_v15, %v344_v12 }
  0xd3   :  { %v512_v18 = vpop.f32.mrf.mxu3  ;;  %v488_v20 = vpop.f32.mrf.mxu0 }
  0xd4   :  { %v3012_v19 = vadd.f32 %v512_v18, %v345_v17  ;;  %v501_v21 = vpop.f32.mrf.mxu1 }
  0xdb   :  { %v514_v22 = vpop.f32.mrf.mxu3 }
  0xdc   :  { %2771 = dma.done.wait [#allocation5], 128 }
  0xdd   :  { %2772 = vsyncadd [#allocation5], 4294967168  ;;  %v2042_v23 = vld [vmem:[#allocation11 + $0xa8] sm:$0xf]  ;;  %v2205_v24 = vld [vmem:[#allocation11 + $0xb0] sm:$0xf0] }
  0xde   :  { %v2204_v25 = vld [vmem:[#allocation11 + $0xac] sm:$0xf]  ;;  %v2043_v26 = vor.u32 %v2205_v24, %v2042_v23  ;;  %v2044_v27 = vld [vmem:[#allocation11 + $0xb4] sm:$0xf0]  ;;  %v2030_v28 = vld [vmem:[#allocation11 + $0x90] sm:$0xf] }
  0xdf   :  { %v2202_v29 = vld [vmem:[#allocation11 + $0x98] sm:$0xf0]  ;;  %v2047_v30 = vor.u32 %v2204_v25, %v2044_v27  ;;  %v2201_v31 = vld [vmem:[#allocation11 + $0x94] sm:$0xf]  ;;  %v2032_v32 = vld [vmem:[#allocation11 + $0x9c] sm:$0xf0] }
  0xe0   :  { %703 = vmatpush.bf16.msrb.mxu3 %v2043_v26  ;;  %v2031_v33 = vor.u32 %v2202_v29, %v2030_v28  ;;  %v2035_v34 = vor.u32 %v2201_v31, %v2032_v32  ;;  %v2018_v35 = vld [vmem:[#allocation11 + $0x78] sm:$0xf]  ;;  %v2199_v36 = vld [vmem:[#allocation11 + $0x80] sm:$0xf0]  ;;  %v2198_v37 = vld [vmem:[#allocation11 + $0x7c] sm:$0xf] }
  0xe1   :  { %716 = vmatpush.bf16.msrb.mxu0 %v2047_v30  ;;  %v2020_v38 = vld [vmem:[#allocation11 + $0x84] sm:$0xf0]  ;;  %v2019_v39 = vor.u32 %v2199_v36, %v2018_v35  ;;  %v2006_v41 = vld [vmem:[#allocation11 + $0x60] sm:$0xf]  ;;  %v2196_v42 = vld [vmem:[#allocation11 + $0x68] sm:$0xf0] }
  0xe2   :  { %v2023_v40 = vor.u32 %v2198_v37, %v2020_v38  ;;  %v2195_v43 = vld [vmem:[#allocation11 + $0x64] sm:$0xf]  ;;  %v2008_v44 = vld [vmem:[#allocation11 + $0x6c] sm:$0xf0]  ;;  %v2007_v46 = vor.u32 %v2196_v42, %v2006_v41  ;;  %v2206_v47 = vld [vmem:[#allocation11 + $0xb8] sm:$0xf0]  ;;  %v881_v37 = vlaneseq }
  0xe3   :  { %v2050_v45 = vld [vmem:[#allocation11 + $0xb0] sm:$0xf]  ;;  %v2038_v48 = vld [vmem:[#allocation11 + $0x98] sm:$0xf]  ;;  %v2011_v49 = vor.u32 %v2195_v43, %v2008_v44  ;;  %v1994_v50 = vld [vmem:[#allocation11 + $0x48] sm:$0xf] }
  0xe4   :  { %704 = vmatpush.bf16.msrb.mxu3 %v2031_v33  ;;  %v2193_v51 = vld [vmem:[#allocation11 + $0x50] sm:$0xf0]  ;;  %v2051_v52 = vor.u32 %v2206_v47, %v2050_v45  ;;  %v2203_v53 = vld [vmem:[#allocation11 + $0xa0] sm:$0xf0]  ;;  %v2192_v54 = vld [vmem:[#allocation11 + $0x4c] sm:$0xf] }
  0xe5   :  { %717 = vmatpush.bf16.msrb.mxu0 %v2035_v34  ;;  %v1996_v55 = vld [vmem:[#allocation11 + $0x54] sm:$0xf0]  ;;  %v2039_v56 = vor.u32 %v2203_v53, %v2038_v48  ;;  %v1995_v57 = vor.u32 %v2193_v51, %v1994_v50  ;;  %v1982_v58 = vld [vmem:[#allocation11 + $0x30] sm:$0xf]  ;;  %v2026_v59 = vld [vmem:[#allocation11 + $0x80] sm:$0xf] }
  0xe6   :  { %729 = vmatpush.bf16.msrb.mxu1 %v2051_v52  ;;  %v2200_v60 = vld [vmem:[#allocation11 + $0x88] sm:$0xf0]  ;;  %v1999_v61 = vor.u32 %v2192_v54, %v1996_v55  ;;  %v2190_v62 = vld [vmem:[#allocation11 + $0x38] sm:$0xf0]  ;;  %v2189_v63 = vld [vmem:[#allocation11 + $0x34] sm:$0xf] }
  0xe7   :  { %v1984_v0 = vld [vmem:[#allocation11 + $0x3c] sm:$0xf0]  ;;  %v2027_v1 = vor.u32 %v2200_v60, %v2026_v59  ;;  %v1983_v2 = vor.u32 %v2190_v62, %v1982_v58  ;;  %v2014_v3 = vld [vmem:[#allocation11 + $0x68] sm:$0xf]  ;;  %v2197_v4 = vld [vmem:[#allocation11 + $0x70] sm:$0xf0] }
  0xe8   :  { %705 = vmatpush.bf16.msrb.mxu3 %v2019_v39  ;;  %v1987_v5 = vor.u32 %v2189_v63, %v1984_v0  ;;  %v1970_v7 = vld [vmem:[#allocation11 + $0x18] sm:$0xf]  ;;  %v2187_v8 = vld [vmem:[#allocation11 + $0x20] sm:$0xf0]  ;;  %v2186_v9 = vld [vmem:[#allocation11 + $0x1c] sm:$0xf]  ;;  %v2015_v11 = vor.u32 %v2197_v4, %v2014_v3 }
  0xe9   :  { %718 = vmatpush.bf16.msrb.mxu0 %v2023_v40  ;;  %v1972_v10 = vld [vmem:[#allocation11 + $0x24] sm:$0xf0]  ;;  %v1971_v12 = vor.u32 %v2187_v8, %v1970_v7  ;;  %v2002_v13 = vld [vmem:[#allocation11 + $0x50] sm:$0xf]  ;;  %v2194_v15 = vld [vmem:[#allocation11 + $0x58] sm:$0xf0] }
  0xea   :  { %730 = vmatpush.bf16.msrb.mxu1 %v2039_v56  ;;  %v1975_v17 = vor.u32 %v2186_v9, %v1972_v10  ;;  %v1958_v18 = vld [vmem:[#allocation11] sm:$0xf]  ;;  %v2184_v20 = vld [vmem:[#allocation11 + $0x8] sm:$0xf0]  ;;  %v2183_v21 = vld [vmem:[#allocation11 + $0x4] sm:$0xf]  ;;  %v2003_v23 = vor.u32 %v2194_v15, %v2002_v13 }
  0xeb   :  { %v1960_v22 = vld [vmem:[#allocation11 + $0xc] sm:$0xf0]  ;;  %v1959_v24 = vor.u32 %v2184_v20, %v1958_v18  ;;  %v533_v25 = vld [vmem:[#allocation2] sm:$0xff]  ;;  %v2191_v27 = vld [vmem:[#allocation11 + $0x40] sm:$0xf0]  ;;  %v882_v38 = vshrl.u32 %v881_v37, 7 }
  0xec   :  { %706 = vmatpush.bf16.msrb.mxu3 %v2007_v46  ;;  %v1990_v26 = vld [vmem:[#allocation11 + $0x38] sm:$0xf]  ;;  %v1963_v28 = vor.u32 %v2183_v21, %v1960_v22  ;;  %v534_v29 = vpack.c.bf16 %v533_v25, %v533_v25  ;;  %v1978_v31 = vld [vmem:[#allocation11 + $0x20] sm:$0xf]  ;;  %v2188_v32 = vld [vmem:[#allocation11 + $0x28] sm:$0xf0] }
  0xed   :  { %719 = vmatpush.bf16.msrb.mxu0 %v2011_v49  ;;  %v1991_v30 = vor.u32 %v2191_v27, %v1990_v26  ;;  %v1979_v33 = vor.u32 %v2188_v32, %v1978_v31  ;;  %v1966_v34 = vld [vmem:[#allocation11 + $0x8] sm:$0xf]  ;;  %v2185_v35 = vld [vmem:[#allocation11 + $0x10] sm:$0xf0]  ;;  %2257 = vset.pattern.permute.xlu0 %v882_v38  ;;  %v889_v39 = vadd.s32 8, %v882_v38  ;;  %v2214_v41 = vld [vmem:[#allocation16 + $0x38] sm:$0xff] }
  0xee   :  { %731 = vmatpush.bf16.msrb.mxu1 %v2027_v1  ;;  %v1967_v36 = vor.u32 %v2185_v35, %v1966_v34  ;;  %v2262_v40 = vld [vmem:[%s3345_s4] ss:$0 sm:$0xff]  ;;  %v2212_v45 = vld [vmem:[#allocation16 + $0x28] sm:$0xff]  ;;  %v2211_v49 = vld [vmem:[#allocation16 + $0x20] sm:$0xff]  ;;  %vm980_vm8 = vcmask 130112   ;;  %vm1003_vm9 = vcmask 1041409  }
  0xef   :  { %2258 = vset.pattern.permute.xlu1 %v889_v39  ;;  %v3021_v42 = vld [vmem:[%s3348_s7] sm:$0x7]  ;;  %v2210_v54 = vld [vmem:[#allocation16 + $0x18] sm:$0xff]  ;;  %v2208_v63 = vld [vmem:[#allocation16 + $0x8] sm:$0xff]  ;;  %vm1005_vm10 = vcmask 1042434   ;;  %vm1007_vm11 = vcmask 1043459  }
  0xf0   :  { %707 = vmatpush.bf16.msrb.mxu3 %v1995_v57  ;;  %v2213_v43 = vld [vmem:[#allocation16 + $0x30] sm:$0xff]  ;;  %v570_v44 = vperm.slane %v3021_v42, 1  ;;  %v569_v48 = vperm.slane %v3021_v42, 0  ;;  %v2207_v1 = vld [vmem:[#allocation16] sm:$0xff]  ;;  %v571_v21 = vperm.slane %v3021_v42, 2  ;;  %vm1009_vm12 = vcmask 1044484  }
  0xf1   :  { %720 = vmatpush.bf16.msrb.mxu0 %v1999_v61  ;;  %v2209_v59 = vld [vmem:[#allocation16 + $0x10] sm:$0xff]  ;;  %v3027_v3 = vld [vmem:[#allocation8 + $0x8] sm:$0xff]  ;;  %v790_v4 = vld [vmem:[#allocation8] sm:$0xff]  ;;  %vm1011_vm13 = vcmask 1045509   ;;  %vm1013_vm14 = vcmask 1046534   ;;  %vm1015_vm15 = vcmask 1047559  }
  0xf2   :  { %732 = vmatpush.bf16.msrb.mxu1 %v2015_v11  ;;  %1247 = vmatpush.msra.mxu2 %v3027_v3  ;;  %v3030_v7 = vld [vmem:[#allocation8 + $0x28] sm:$0xff]  ;;  %v3032_v8 = vld [vmem:[#allocation8 + $0x18] sm:$0xff]  ;;  %v794_v10 = vld [vmem:[#allocation8 + $0x20] sm:$0xff]  ;;  %s2801_s25 = smov [#allocation23]   ;;  %s1819_s16 = sshll.u32 %s3356_s15, 4  ;;  %s1820_s16 = int_to_ptr.hbm [resolvable:$true] %s1819_s16 }
  0xf3   :  { %v792_v11 = vld [vmem:[#allocation8 + $0x10] sm:$0xff]  ;;  %v3036_v13 = vld [vmem:[#allocation8 + $0x38] sm:$0xff]  ;;  %s1817_s2 = sshll.u32 %s2801_s25, 4  ;;  %s1808_s20 = sshll.u32 %s3355_s14, 4  ;;  %s1818_s2 = int_to_ptr.vmem [resolvable:$true] %s1817_s2  ;;  %s1809_s20 = int_to_ptr.hbm [resolvable:$true] %s1808_s20 }
  0xf4   :  { %708 = vmatpush.bf16.msrb.mxu3 %v1983_v2  ;;  %1248 = vmatpush.msra.mxu2 %v790_v4  ;;  %v3039_v18 = vld [vmem:[#allocation8 + $0x30] sm:$0xff] }
  0xf5   :  { %721 = vmatpush.bf16.msrb.mxu0 %v1987_v5  ;;  %885 = vperm.xlu0 %2257, %v2262_v40  }
  0xf6   :  { %733 = vmatpush.bf16.msrb.mxu1 %v2003_v23  ;;  %1313 = vmatpush.msrb.mxu2 %v3030_v7 }
  0xf7   :  { %891 = vperm.xlu1 %2258, %v2262_v40  }
  0xf8   :  { %709 = vmatpush.bf16.msrb.mxu3 %v1971_v12  ;;  %1314 = vmatpush.msrb.mxu2 %v794_v10 }
  0xf9   :  { %722 = vmatpush.bf16.msrb.mxu0 %v1975_v17 }
  0xfa   :  { %734 = vmatpush.bf16.msrb.mxu1 %v1991_v30 }
  0xfc   :  { %710 = vmatpush.bf16.msrb.mxu3 %v1959_v24 }
  0xfd   :  { %723 = vmatpush.bf16.msrb.mxu0 %v1963_v28 }
  0xfe   :  { %735 = vmatpush.bf16.msrb.mxu1 %v1979_v33 }
  0xff   :  { %711 = vmatmul.bf16.vlgmr.msrb.gmra.mxu3 %v534_v29 }
 0x100   :  { %724 = vmatmul.bf16.vlgmr.msrb.gmra.mxu0 %v534_v29  ;;  %1280 = vmatpush.msra.mxu3 %v3032_v8 }
 0x102   :  { %736 = vmatpush.bf16.msrb.mxu1 %v1967_v36  ;;  %1281 = vmatpush.msra.mxu3 %v792_v11 }
 0x104   :  { %1346 = vmatpush.msrb.mxu3 %v3036_v13 }
 0x105   :  { %737 = vmatmul.bf16.vlgmr.msrb.gmra.mxu1 %v534_v29 }
 0x106   :  { %1666 = vmatpush.bf16.msra.mxu1 %v2214_v41  ;;  %1347 = vmatpush.msrb.mxu3 %v3039_v18 }
 0x10a   :  { %1667 = vmatpush.bf16.msra.mxu1 %v2213_v43 }
 0x10e   :  { %1668 = vmatpush.bf16.msra.mxu1 %v2212_v45 }
 0x112   :  { %1669 = vmatpush.bf16.msra.mxu1 %v2211_v49 }
 0x116   :  { %1670 = vmatpush.bf16.msra.mxu1 %v2210_v54 }
 0x11a   :  { %1671 = vmatpush.bf16.msra.mxu1 %v2209_v59 }
 0x11e   :  { %1672 = vmatpush.bf16.msra.mxu1 %v2208_v63 }
 0x122   :  { %1673 = vmatpush.bf16.msra.mxu1 %v2207_v1 }
 0x17d   :  { %v725_v46 = vpop.f32.mrf.mxu0 }
 0x17e   :  { %v726_v47 = vadd.f32 %v725_v46, %v570_v44 }
 0x180   :  { %v762_v50 = vadd.f32 %v726_v47, %v3010_v16 }
 0x182   :  { %v2053_v51 = vmul.f32 -1.442695, %v762_v50  ;;  %v712_v52 = vpop.f32.mrf.mxu3  ;;  %v738_v58 = vpop.f32.mrf.mxu1 }
 0x183   :  { %v713_v53 = vadd.f32 %v712_v52, %v569_v48  ;;  %v739_v28 = vadd.f32 %v738_v58, %v571_v21  ;;  %v3048_v58 = vld [vmem:[#allocation8 + $0x60] sm:$0xff]  ;;  %v886_v21 = vpop.permute.xlu0 %885 }
 0x184   :  { %2265 = vpow2.f32 %v2053_v51 }
 0x185   :  { %v742_v55 = vadd.f32 %v713_v53, %v3008_v14  ;;  %v727_v56 = vpop.f32.mrf.mxu0 }
 0x187   :  { %v2052_v57 = vmul.f32 -1.442695, %v742_v55 }
 0x189   :  { %2267 = vpow2.f32 %v2052_v57 }
 0x18a   :  { %v2266_v60 = vpop.eup %2265  ;;  %v714_v61 = vpop.f32.mrf.mxu3 }
 0x18b   :  { %v766_v62 = vadd.f32 1.0, %v2266_v60  ;;  %v740_v0 = vpop.f32.mrf.mxu1  ;;  %v3050_v61 = vld [vmem:[#allocation8 + $0x50] sm:$0xff] }
 0x18d   :  { %2269 = vrcp.f32 %v766_v62  ;;  %vm772_vm2 = vweird.f32 %v766_v62  ;;  %v778_v27 = vand.u32 2147483648, %v766_v62  ;;  %v776_v32 = vand.u32 2147483647, %v766_v62 }
 0x18f   :  { %v2268_v16 = vpop.eup %2267  ;;  %v779_v34 = vor.u32 1.1754944e-38, %v778_v27  ;;  %vm777_vm7 = vcmp.eq.f32.partialorder %v776_v32, 8.507059e+37 }
 0x190   :  { %v746_v2 = vadd.f32 1.0, %v2268_v16 }
 0x192   :  { %2271 = vrcp.f32 %v746_v2  ;;  %v758_v20 = vand.u32 2147483648, %v746_v2  ;;  %v756_v23 = vand.u32 2147483647, %v746_v2  ;;  %vm752_vm1 = vweird.f32 %v746_v2 }
 0x193   :  { %v2270_v14 = vpop.eup %2269 }
 0x194   :  { %v768_v5 = vmul.f32 %v2270_v14, %v766_v62  ;;  %vm773_vm3 = vweird.f32 %v2270_v14  ;;  %v759_v26 = vor.u32 1.1754944e-38, %v758_v20  ;;  %vm757_vm5 = vcmp.eq.f32.partialorder %v756_v23, 8.507059e+37 }
 0x195   :  { %vm774_vm6 = vmor %vm772_vm2, %vm773_vm3  ;;  %v2800_v20 = vmov 0  }
 0x196   :  { %v769_v15 = vsub.f32 1.0, %v768_v5  ;;  %2259 = vset.pattern.permute.xlu2 %v2800_v20  ;;  %2261 = vset.pattern.permute.xlu0 %v2800_v20 }
 0x197   :  { %2260 = vset.pattern.permute.xlu1 %v2800_v20 }
 0x198   :  { %v2272_v9 = vpop.eup %2271  ;;  %v770_v24 = vmul.f32 %v2270_v14, %v769_v15 }
 0x199   :  { %v748_v12 = vmul.f32 %v2272_v9, %v746_v2  ;;  %vm753_vm0 = vweird.f32 %v2272_v9 }
 0x19a   :  { %vm754_vm4 = vmor %vm752_vm1, %vm753_vm0  ;;  %v771_v31 = vadd.f32 %v2270_v14, %v770_v24  ;;  %vm1018_vm0 = vcmask 130048  }
 0x19b   :  { %v749_v17 = vsub.f32 1.0, %v748_v12 }
 0x19c   :  { %v775_v36 = vsel %vm774_vm6, %v2270_v14, %v771_v31  ;;  %v3056_v14 = vld [vmem:[#allocation8 + $0x40] sm:$0xff] }
 0x19d   :  { %v750_v22 = vmul.f32 %v2272_v9, %v749_v17  ;;  %v780_v38 = vsel %vm777_vm7, %v779_v34, %v775_v36  ;;  %v3071_v17 = vld [vmem:[#allocation8 + $0x78] sm:$0xff] }
 0x19e   :  { %v785_v39 = vsub.f32 1.0, %v780_v38  ;;  %v787_v42 = vmul.f32 %v780_v38, %v2928_v6 }
 0x19f   :  { %v751_v25 = vadd.f32 %v2272_v9, %v750_v22  ;;  %v892_v22 = vpop.permute.xlu1 %891 }
 0x1a1   :  { %v755_v29 = vsel %vm754_vm4, %v2272_v9, %v751_v25  ;;  %v3065_v9 = vld [vmem:[#allocation8 + $0x68] sm:$0xff] }
 0x1a2   :  { %v760_v30 = vsel %vm757_vm5, %v759_v26, %v755_v29 }
 0x1a3   :  { %v782_v33 = vmul.f32 %v760_v30, %v3012_v19 }
 0x1a5   :  { %v783_v35 = vadd.f32 %v782_v33, %v739_v28 }
 0x1a7   :  { %2273 = vtanh.f32 %v783_v35 }
 0x1ad   :  { %v2274_v40 = vpop.eup %2273 }
 0x1ae   :  { %v786_v41 = vmul.f32 %v2274_v40, %v785_v39 }
 0x1b0   :  { %v788_v43 = vadd.f32 %v787_v42, %v786_v41 }
 0x1b2   :  { %789 = vst [vmem:[#allocation23] sm:$0xff] %v788_v43  ;;  %v1484_v44 = vpack.c.bf16 %v788_v43, %v788_v43  ;;  %v814_v45 = vperm.slane %v788_v43, 0  ;;  %v808_v46 = vrot.slane %v788_v43, 2  ;;  %v807_v47 = vrot.slane %v788_v43, 1 }
 0x1b3   :  { %v812_v53 = vrot.slane %v788_v43, 6  ;;  %v809_v55 = vrot.slane %v788_v43, 3  ;;  %v811_v56 = vrot.slane %v788_v43, 5  ;;  %v810_v1 = vrot.slane %v788_v43, 4  ;;  %1822 = dma.vmem_to_hbm [thread:$0]  %s1818_s2, 128, %s1820_s16, [#allocation24]  }
 0x1b4   :  { %1674 = vmatmul.bf16.vlgmr.msra.gmra.mxu1 %v1484_v44  ;;  %v830_v48 = vmul.f32 %v814_v45, %v790_v4  ;;  %v816_v19 = vperm.slane %v808_v46, 0  ;;  %v815_v49 = vperm.slane %v807_v47, 0  ;;  %v831_v52 = vmul.f32 %v814_v45, %v3027_v3  ;;  %v3059_v4 = vld [vmem:[#allocation8 + $0x48] sm:$0xff] }
 0x1b5   :  { %v820_v57 = vperm.slane %v812_v53, 0  ;;  %v817_v59 = vperm.slane %v809_v55, 0  ;;  %v819_v60 = vperm.slane %v811_v56, 0  ;;  %v818_v2 = vperm.slane %v810_v1, 0 }
 0x1b6   :  { %846 = vadd.xlane.f32.xlu0 %v830_v48  ;;  %v834_v50 = vmul.f32 %v816_v19, %v794_v10  ;;  %v832_v51 = vmul.f32 %v815_v49, %v792_v11  ;;  %v835_v6 = vmul.f32 %v816_v19, %v3030_v7  ;;  %v833_v54 = vmul.f32 %v815_v49, %v3032_v8  ;;  %v3062_v7 = vld [vmem:[#allocation8 + $0x58] sm:$0xff] }
 0x1b7   :  { %v842_v62 = vmul.f32 %v820_v57, %v3048_v58  ;;  %v836_v63 = vmul.f32 %v817_v59, %v3039_v18  ;;  %v840_v16 = vmul.f32 %v819_v60, %v3050_v61  ;;  %v837_v0 = vmul.f32 %v817_v59, %v3036_v13  ;;  %v3068_v13 = vld [vmem:[#allocation8 + $0x70] sm:$0xff] }
 0x1b8   :  { %854 = vadd.xlane.f32.xlu2 %v834_v50  ;;  %850 = vadd.xlane.f32.xlu1 %v832_v51  ;;  %v838_v3 = vmul.f32 %v818_v2, %v3056_v14  ;;  %v839_v5 = vmul.f32 %v818_v2, %v3059_v4  ;;  %v841_v8 = vmul.f32 %v819_v60, %v3062_v7  ;;  %v813_v11 = vrot.slane %v788_v43, 7 }
 0x1b9   :  { %v843_v10 = vmul.f32 %v820_v57, %v3065_v9 }
 0x1ba   :  { %v821_v12 = vperm.slane %v813_v11, 0 }
 0x1bc   :  { %v844_v15 = vmul.f32 %v821_v12, %v3068_v13  ;;  %v845_v18 = vmul.f32 %v821_v12, %v3071_v17 }
 0x1be   :  { %848 = vadd.xlane.f32.xlu0 %v831_v52 }
 0x1c0   :  { %856 = vadd.xlane.f32.xlu2 %v835_v6  ;;  %852 = vadd.xlane.f32.xlu1 %v833_v54 }
 0x1c6   :  { %870 = vadd.xlane.f32.xlu0 %v842_v62 }
 0x1c8   :  { %858 = vadd.xlane.f32.xlu2 %v836_v63  ;;  %866 = vadd.xlane.f32.xlu1 %v840_v16 }
 0x1d0   :  { %860 = vadd.xlane.f32.xlu2 %v837_v0 }
 0x1d8   :  { %862 = vadd.xlane.f32.xlu2 %v838_v3 }
 0x1e0   :  { %864 = vadd.xlane.f32.xlu2 %v839_v5  ;;  %v3125_v5 = vand.u32 127, %v881_v37 }
 0x1e8   :  { %868 = vadd.xlane.f32.xlu2 %v841_v8  ;;  %v3128_v8 = vadd.s32 4294967288, %v3125_v5 }
 0x1f0   :  { %872 = vadd.xlane.f32.xlu2 %v843_v10 }
 0x1f8   :  { %874 = vadd.xlane.f32.xlu2 %v844_v15 }
 0x200   :  { %876 = vadd.xlane.f32.xlu2 %v845_v18 }
 0x229   :  { %v847_v23 = vpop.xlane.xlu0 %846 }
 0x22a   :  { %v3074_v24 = vadd.f32 %v886_v21, %v847_v23 }
 0x22b   :  { %v855_v25 = vpop.xlane.xlu2 %854  ;;  %v851_v26 = vpop.xlane.xlu1 %850 }
 0x22c   :  { %v3076_v27 = vadd.f32 %v886_v21, %v851_v26  ;;  %928 = vperm.xlu2 %2259, %v3074_v24   ;;  %v3088_v36 = vadd.f32 %v886_v21, %v855_v25 }
 0x22e   :  { %934 = vperm.xlu0 %2261, %v3076_v27  }
 0x231   :  { %v3080_v28 = vpop.f32.mrf.mxu1  ;;  %v849_v29 = vpop.xlane.xlu0 %848 }
 0x232   :  { %v3082_v30 = vadd.f32 %v892_v22, %v849_v29 }
 0x233   :  { %v857_v31 = vpop.xlane.xlu2 %856  ;;  %v853_v32 = vpop.xlane.xlu1 %852 }
 0x234   :  { %v3084_v33 = vadd.f32 %v892_v22, %v853_v32  ;;  %931 = vperm.xlu1 %2260, %v3082_v30   ;;  %v3092_v40 = vadd.f32 %v892_v22, %v857_v31 }
 0x236   :  { %937 = vperm.xlu2 %2259, %v3084_v33  }
 0x239   :  { %v1677_v34 = vpop.f32.mrf.mxu1  ;;  %v871_v35 = vpop.xlane.xlu0 %870 }
 0x23a   :  { %v3090_v38 = vadd.f32 %v886_v21, %v871_v35 }
 0x23b   :  { %v859_v39 = vpop.xlane.xlu2 %858  ;;  %v867_v46 = vpop.xlane.xlu1 %866 }
 0x23c   :  { %940 = vperm.xlu1 %2260, %v3088_v36   ;;  %964 = vperm.xlu0 %2261, %v3090_v38   ;;  %v3097_v41 = vadd.f32 %v886_v21, %v859_v39  ;;  %v3106_v48 = vadd.f32 %v886_v21, %v867_v46 }
 0x23e   :  { %943 = vperm.xlu2 %2259, %v3092_v40  }
 0x243   :  { %v861_v42 = vpop.xlane.xlu2 %860 }
 0x244   :  { %v3099_v43 = vadd.f32 %v892_v22, %v861_v42  ;;  %946 = vperm.xlu1 %2260, %v3097_v41  }
 0x246   :  { %949 = vperm.xlu2 %2259, %v3099_v43  }
 0x24b   :  { %v863_v44 = vpop.xlane.xlu2 %862 }
 0x24c   :  { %v3103_v45 = vadd.f32 %v886_v21, %v863_v44 }
 0x24e   :  { %952 = vperm.xlu1 %2260, %v3103_v45  }
 0x253   :  { %v865_v47 = vpop.xlane.xlu2 %864 }
 0x254   :  { %v3108_v19 = vadd.f32 %v892_v22, %v865_v47 }
 0x256   :  { %955 = vperm.xlu2 %2259, %v3108_v19   ;;  %958 = vperm.xlu1 %2260, %v3106_v48  }
 0x25b   :  { %v869_v49 = vpop.xlane.xlu2 %868 }
 0x25c   :  { %v3112_v50 = vadd.f32 %v892_v22, %v869_v49 }
 0x25e   :  { %961 = vperm.xlu2 %2259, %v3112_v50  }
 0x263   :  { %v873_v51 = vpop.xlane.xlu2 %872 }
 0x264   :  { %v3115_v52 = vadd.f32 %v892_v22, %v873_v51 }
 0x266   :  { %967 = vperm.xlu1 %2260, %v3115_v52  }
 0x26b   :  { %v875_v53 = vpop.xlane.xlu2 %874 }
 0x26c   :  { %v3118_v6 = vadd.f32 %v886_v21, %v875_v53 }
 0x26e   :  { %970 = vperm.xlu2 %2259, %v3118_v6  }
 0x273   :  { %v877_v54 = vpop.xlane.xlu2 %876 }
 0x274   :  { %v3121_v55 = vadd.f32 %v892_v22, %v877_v54 }
 0x276   :  { %973 = vperm.xlu0 %2261, %v3121_v55  }
 0x286   :  { %v929_v56 = vpop.permute.xlu2 %928 }
 0x287   :  { %v977_v18 = vperm.slane %v929_v56, %v3125_v5 }
 0x290   :  { %v938_v59 = vpop.permute.xlu2 %937 }
 0x291   :  { %v983_v25 = vperm.slane %v938_v59, %v3128_v8 }
 0x298   :  { %v944_v62 = vpop.permute.xlu2 %943 }
 0x299   :  { %v986_v23 = vperm.slane %v944_v62, %v3128_v8 }
 0x2a0   :  { %v950_v16 = vpop.permute.xlu2 %949  ;;  %v935_v2 = vpop.permute.xlu0 %934 }
 0x2a1   :  { %v982_v20 = vperm.slane %v935_v2, %v3125_v5  ;;  %v989_v26 = vperm.slane %v950_v16, %v3128_v8 }
 0x2a3   :  { %v984_v39 = vsel %vm980_vm8, %v983_v25, %v982_v20 }
 0x2a6   :  { %v932_v57 = vpop.permute.xlu1 %931 }
 0x2a7   :  { %v979_v11 = vperm.slane %v932_v57, %v3128_v8 }
 0x2a9   :  { %v981_v29 = vsel %vm980_vm8, %v979_v11, %v977_v18 }
 0x2aa   :  { %v1004_v46 = vsel %vm1003_vm9, %v984_v39, %v981_v29 }
 0x2ae   :  { %v941_v60 = vpop.permute.xlu1 %940  ;;  %v965_v12 = vpop.permute.xlu0 %964 }
 0x2af   :  { %v985_v15 = vperm.slane %v941_v60, %v3125_v5  ;;  %v997_v47 = vperm.slane %v965_v12, %v3125_v5 }
 0x2b0   :  { %v956_v1 = vpop.permute.xlu2 %955 }
 0x2b1   :  { %v987_v32 = vsel %vm980_vm8, %v986_v23, %v985_v15  ;;  %v992_v34 = vperm.slane %v956_v1, %v3128_v8 }
 0x2b2   :  { %v1006_v53 = vsel %vm1005_vm10, %v987_v32, %v1004_v46 }
 0x2b6   :  { %v947_v63 = vpop.permute.xlu1 %946 }
 0x2b7   :  { %v988_v21 = vperm.slane %v947_v63, %v3125_v5 }
 0x2b8   :  { %v962_v10 = vpop.permute.xlu2 %961 }
 0x2b9   :  { %v990_v42 = vsel %vm980_vm8, %v989_v26, %v988_v21  ;;  %v995_v44 = vperm.slane %v962_v10, %v3128_v8 }
 0x2ba   :  { %v1008_v56 = vsel %vm1007_vm11, %v990_v42, %v1006_v53 }
 0x2c0   :  { %v953_v0 = vpop.permute.xlu1 %952 }
 0x2c1   :  { %v991_v37 = vperm.slane %v953_v0, %v3125_v5 }
 0x2c3   :  { %v993_v49 = vsel %vm980_vm8, %v992_v34, %v991_v37 }
 0x2c4   :  { %v1010_v60 = vsel %vm1009_vm12, %v993_v49, %v1008_v56 }
 0x2c8   :  { %v959_v3 = vpop.permute.xlu1 %958  ;;  %v971_v51 = vpop.permute.xlu2 %970 }
 0x2c9   :  { %v994_v31 = vperm.slane %v959_v3, %v3125_v5  ;;  %v1000_v62 = vperm.slane %v971_v51, %v3125_v5 }
 0x2cb   :  { %v996_v54 = vsel %vm980_vm8, %v995_v44, %v994_v31 }
 0x2cc   :  { %v1012_v16 = vsel %vm1011_vm13, %v996_v54, %v1010_v60 }
 0x2d8   :  { %v968_v22 = vpop.permute.xlu1 %967 }
 0x2d9   :  { %v998_v35 = vperm.slane %v968_v22, %v3128_v8 }
 0x2db   :  { %v999_v57 = vsel %vm980_vm8, %v998_v35, %v997_v47 }
 0x2dc   :  { %v1014_v1 = vsel %vm1013_vm14, %v999_v57, %v1012_v16 }
 0x2e8   :  { %v974_v59 = vpop.permute.xlu0 %973 }
 0x2e9   :  { %v1001_v63 = vperm.slane %v974_v59, %v3128_v8 }
 0x2eb   :  { %v1002_v0 = vsel %vm980_vm8, %v1001_v63, %v1000_v62 }
 0x2ec   :  { %v1016_v2 = vsel %vm1015_vm15, %v1002_v0, %v1014_v1 }
 0x2ed   :  { %v1019_v3 = vsel %vm1018_vm0, %v1016_v2, -inf }
 0x2ee   :  { %1020 = vmax.xlane.f32.xlu1 %v1019_v3 }
 0x361   :  { %v3162_v10 = vpop.xlane.xlu1 %1020 }
 0x362   :  { %v1028_v11 = vperm.slane %v3162_v10, 5  ;;  %v1023_v12 = vperm.slane %v3162_v10, 0  ;;  %v1024_v21 = vperm.slane %v3162_v10, 1  ;;  %v1025_v31 = vperm.slane %v3162_v10, 2 }
 0x363   :  { %v1026_v35 = vperm.slane %v3162_v10, 3 }
 0x364   :  { %v1049_v15 = vsub.f32 %v3106_v48, %v1028_v11  ;;  %v1040_v18 = vsub.f32 %v3082_v30, %v1023_v12  ;;  %v1039_v20 = vsub.f32 %v3074_v24, %v1023_v12  ;;  %v1042_v25 = vsub.f32 %v3084_v33, %v1024_v21 }
 0x365   :  { %v1041_v26 = vsub.f32 %v3076_v27, %v1024_v21  ;;  %v1044_v33 = vsub.f32 %v3092_v40, %v1025_v31  ;;  %v1043_v27 = vsub.f32 %v3088_v36, %v1025_v31  ;;  %v1046_v46 = vsub.f32 %v3099_v43, %v1026_v35 }
 0x366   :  { %v1075_v22 = vmul.f32 1.442695, %v1049_v15  ;;  %v1057_v23 = vmul.f32 1.442695, %v1040_v18  ;;  %v1055_v37 = vmul.f32 1.442695, %v1039_v20  ;;  %v1045_v40 = vsub.f32 %v3097_v41, %v1026_v35 }
 0x367   :  { %v1061_v29 = vmul.f32 1.442695, %v1042_v25  ;;  %v1059_v30 = vmul.f32 1.442695, %v1041_v26  ;;  %v1065_v34 = vmul.f32 1.442695, %v1044_v33 }
 0x368   :  { %2275 = vpow2.f32 %v1075_v22  ;;  %v1063_v39 = vmul.f32 1.442695, %v1043_v27  ;;  %v1069_v47 = vmul.f32 1.442695, %v1046_v46  ;;  %v1027_v36 = vperm.slane %v3162_v10, 4 }
 0x369   :  { %2277 = vpow2.f32 %v1057_v23  ;;  %v1067_v49 = vmul.f32 1.442695, %v1045_v40  ;;  %v1029_v41 = vperm.slane %v3162_v10, 6 }
 0x36a   :  { %2279 = vpow2.f32 %v1055_v37  ;;  %v1048_v54 = vsub.f32 %v3108_v19, %v1027_v36  ;;  %v1047_v43 = vsub.f32 %v3103_v45, %v1027_v36  ;;  %v1050_v19 = vsub.f32 %v3112_v50, %v1028_v11 }
 0x36b   :  { %2281 = vpow2.f32 %v1061_v29  ;;  %v1051_v62 = vsub.f32 %v3090_v38, %v1029_v41  ;;  %v1030_v45 = vperm.slane %v3162_v10, 7  ;;  %v1052_v38 = vsub.f32 %v3115_v52, %v1029_v41 }
 0x36c   :  { %2283 = vpow2.f32 %v1059_v30  ;;  %v1073_v56 = vmul.f32 1.442695, %v1048_v54  ;;  %v1071_v57 = vmul.f32 1.442695, %v1047_v43  ;;  %v1077_v16 = vmul.f32 1.442695, %v1050_v19 }
 0x36d   :  { %2285 = vpow2.f32 %v1065_v34  ;;  %v1079_v63 = vmul.f32 1.442695, %v1051_v62  ;;  %v1053_v2 = vsub.f32 %v3118_v6, %v1030_v45  ;;  %v1081_v50 = vmul.f32 1.442695, %v1052_v38 }
 0x36e   :  { %v3173_v48 = vpop.eup %2275  ;;  %2287 = vpow2.f32 %v1063_v39  ;;  %v1054_v12 = vsub.f32 %v3121_v55, %v1030_v45 }
 0x36f   :  { %v3175_v32 = vpop.eup %2277  ;;  %1134 = vperm.xlu1 %2260, %v3173_v48   ;;  %2289 = vpow2.f32 %v1069_v47  ;;  %v1083_v3 = vmul.f32 1.442695, %v1053_v2 }
 0x370   :  { %v3178_v24 = vpop.eup %2279  ;;  %1107 = vperm.xlu0 %2261, %v3175_v32   ;;  %2291 = vpow2.f32 %v1067_v49  ;;  %v1085_v15 = vmul.f32 1.442695, %v1054_v12 }
 0x371   :  { %1104 = vperm.xlu2 %2259, %v3178_v24   ;;  %v3185_v42 = vpop.eup %2281  ;;  %2293 = vpow2.f32 %v1073_v56 }
 0x372   :  { %v3187_v44 = vpop.eup %2283  ;;  %2295 = vpow2.f32 %v1071_v57 }
 0x373   :  { %v3194_v51 = vpop.eup %2285  ;;  %2297 = vpow2.f32 %v1079_v63 }
 0x374   :  { %v3196_v53 = vpop.eup %2287  ;;  %2299 = vpow2.f32 %v1077_v16 }
 0x375   :  { %v3203_v59 = vpop.eup %2289  ;;  %2301 = vpow2.f32 %v1083_v3 }
 0x376   :  { %v3205_v60 = vpop.eup %2291  ;;  %2303 = vpow2.f32 %v1081_v50 }
 0x377   :  { %v3212_v0 = vpop.eup %2293  ;;  %2305 = vpow2.f32 %v1085_v15 }
 0x378   :  { %1113 = vperm.xlu0 %2261, %v3185_v42   ;;  %v3214_v1 = vpop.eup %2295 }
 0x379   :  { %1110 = vperm.xlu2 %2259, %v3187_v44   ;;  %v3220_v11 = vpop.eup %2297 }
 0x37a   :  { %v3222_v10 = vpop.eup %2299 }
 0x37b   :  { %v3227_v18 = vpop.eup %2301 }
 0x37c   :  { %v3229_v6 = vpop.eup %2303 }
 0x37d   :  { %v3233_v52 = vpop.eup %2305 }
 0x380   :  { %1119 = vperm.xlu0 %2261, %v3194_v51  }
 0x381   :  { %1116 = vperm.xlu2 %2259, %v3196_v53  }
 0x388   :  { %1125 = vperm.xlu0 %2261, %v3203_v59  }
 0x389   :  { %1122 = vperm.xlu2 %2259, %v3205_v60  }
 0x390   :  { %1131 = vperm.xlu0 %2261, %v3212_v0  }
 0x391   :  { %1128 = vperm.xlu2 %2259, %v3214_v1  }
 0x398   :  { %1140 = vperm.xlu0 %2261, %v3220_v11  }
 0x399   :  { %1137 = vperm.xlu2 %2259, %v3222_v10  }
 0x3a0   :  { %1146 = vperm.xlu0 %2261, %v3227_v18  }
 0x3a1   :  { %1143 = vperm.xlu2 %2259, %v3229_v6  }
 0x3a9   :  { %1149 = vperm.xlu2 %2259, %v3233_v52  }
 0x3cb   :  { %v1105_v20 = vpop.permute.xlu2 %1104 }
 0x3cc   :  { %v1151_v49 = vperm.slane %v1105_v20, %v3125_v5 }
 0x3d3   :  { %v1111_v21 = vpop.permute.xlu2 %1110 }
 0x3d4   :  { %v1154_v35 = vperm.slane %v1111_v21, %v3125_v5 }
 0x3db   :  { %v1117_v22 = vpop.permute.xlu2 %1116 }
 0x3dc   :  { %v1157_v40 = vperm.slane %v1117_v22, %v3125_v5 }
 0x3e1   :  { %v1135_v19 = vpop.permute.xlu1 %1134 }
 0x3e2   :  { %v1108_v23 = vpop.permute.xlu0 %1107  ;;  %v1166_v15 = vperm.slane %v1135_v19, %v3125_v5 }
 0x3e3   :  { %v1123_v37 = vpop.permute.xlu2 %1122  ;;  %v1152_v39 = vperm.slane %v1108_v23, %v3128_v8 }
 0x3e4   :  { %v1160_v54 = vperm.slane %v1123_v37, %v3125_v5 }
 0x3e5   :  { %v1153_v57 = vsel %vm980_vm8, %v1152_v39, %v1151_v49 }
 0x3ea   :  { %v1114_v55 = vpop.permute.xlu0 %1113 }
 0x3eb   :  { %v1129_v25 = vpop.permute.xlu2 %1128  ;;  %v1155_v27 = vperm.slane %v1114_v55, %v3128_v8 }
 0x3ec   :  { %v1163_v56 = vperm.slane %v1129_v25, %v3125_v5 }
 0x3ed   :  { %v1156_v43 = vsel %vm980_vm8, %v1155_v27, %v1154_v35 }
 0x3ee   :  { %v1175_v63 = vsel %vm1003_vm9, %v1156_v43, %v1153_v57 }
 0x3f2   :  { %v1120_v26 = vpop.permute.xlu0 %1119 }
 0x3f3   :  { %v1138_v31 = vpop.permute.xlu2 %1137  ;;  %v1158_v34 = vperm.slane %v1120_v26, %v3128_v8 }
 0x3f4   :  { %v1167_v38 = vperm.slane %v1138_v31, %v3128_v8 }
 0x3f5   :  { %v1159_v41 = vsel %vm980_vm8, %v1158_v34, %v1157_v40 }
 0x3f6   :  { %v1176_v2 = vsel %vm1005_vm10, %v1159_v41, %v1175_v63  ;;  %v1168_v23 = vsel %vm980_vm8, %v1167_v38, %v1166_v15 }
 0x3fa   :  { %v1126_v29 = vpop.permute.xlu0 %1125 }
 0x3fb   :  { %v1144_v33 = vpop.permute.xlu2 %1143  ;;  %v1161_v46 = vperm.slane %v1126_v29, %v3128_v8 }
 0x3fc   :  { %v1170_v50 = vperm.slane %v1144_v33, %v3128_v8 }
 0x3fd   :  { %v1162_v62 = vsel %vm980_vm8, %v1161_v46, %v1160_v54 }
 0x3fe   :  { %v1177_v3 = vsel %vm1007_vm11, %v1162_v62, %v1176_v2 }
 0x402   :  { %v1132_v30 = vpop.permute.xlu0 %1131 }
 0x403   :  { %v1164_v47 = vperm.slane %v1132_v30, %v3128_v8  ;;  %v1150_v12 = vpop.permute.xlu2 %1149 }
 0x404   :  { %v1173_v37 = vperm.slane %v1150_v12, %v3128_v8 }
 0x405   :  { %v1165_v45 = vsel %vm980_vm8, %v1164_v47, %v1163_v56 }
 0x406   :  { %v1178_v20 = vsel %vm1009_vm12, %v1165_v45, %v1177_v3 }
 0x407   :  { %v1179_v25 = vsel %vm1011_vm13, %v1168_v23, %v1178_v20 }
 0x40a   :  { %v1141_v36 = vpop.permute.xlu0 %1140 }
 0x40b   :  { %v1169_v16 = vperm.slane %v1141_v36, %v3125_v5 }
 0x40d   :  { %v1171_v21 = vsel %vm980_vm8, %v1170_v50, %v1169_v16 }
 0x40e   :  { %v1180_v29 = vsel %vm1013_vm14, %v1171_v21, %v1179_v25 }
 0x412   :  { %v1147_v22 = vpop.permute.xlu0 %1146 }
 0x413   :  { %v1172_v55 = vperm.slane %v1147_v22, %v3125_v5 }
 0x415   :  { %v1174_v26 = vsel %vm980_vm8, %v1173_v37, %v1172_v55 }
 0x416   :  { %v1181_v31 = vsel %vm1015_vm15, %v1174_v26, %v1180_v29 }
 0x417   :  { %v1183_v30 = vsel %vm1018_vm0, %v1181_v31, 0.0 }
 0x418   :  { %1184 = vadd.xlane.f32.xlu0 %v1183_v30 }
 0x48b   :  { %v1185_v33 = vpop.xlane.xlu0 %1184 }
 0x48c   :  { %2307 = vrcp.f32 %v1185_v33 }
 0x492   :  { %v2308_v27 = vpop.eup %2307 }
 0x493   :  { %v1193_v34 = vperm.slane %v2308_v27, 5  ;;  %v1188_v35 = vperm.slane %v2308_v27, 0  ;;  %v1189_v47 = vperm.slane %v2308_v27, 1  ;;  %v1190_v54 = vperm.slane %v2308_v27, 2 }
 0x494   :  { %v1192_v41 = vperm.slane %v2308_v27, 4  ;;  %v1194_v57 = vperm.slane %v2308_v27, 6  ;;  %v1195_v62 = vperm.slane %v2308_v27, 7 }
 0x495   :  { %v1214_v39 = vmul.f32 %v3173_v48, %v1193_v34  ;;  %v1205_v46 = vmul.f32 %v3175_v32, %v1188_v35  ;;  %v1204_v40 = vmul.f32 %v3178_v24, %v1188_v35  ;;  %v1207_v36 = vmul.f32 %v3185_v42, %v1189_v47 }
 0x496   :  { %v1206_v49 = vmul.f32 %v3187_v44, %v1189_v47  ;;  %v1209_v43 = vmul.f32 %v3194_v51, %v1190_v54  ;;  %v1208_v56 = vmul.f32 %v3196_v53, %v1190_v54  ;;  %v1191_v48 = vperm.slane %v2308_v27, 3  ;;  %v2220_v47 = vld [vmem:[#allocation17 + $0x28] sm:$0xff] }
 0x497   :  { %1388 = vperm.xlu0 %2261, %v1214_v39   ;;  %1226 = vperm.xlu2 %2259, %v1205_v46   ;;  %v1213_v42 = vmul.f32 %v3212_v0, %v1192_v41  ;;  %v1212_v44 = vmul.f32 %v3214_v1, %v1192_v41  ;;  %v1216_v51 = vmul.f32 %v3220_v11, %v1194_v57  ;;  %v2222_v46 = vld [vmem:[#allocation17 + $0x38] sm:$0xff] }
 0x498   :  { %1223 = vperm.xlu1 %2260, %v1204_v40   ;;  %v1211_v32 = vmul.f32 %v3203_v59, %v1191_v48  ;;  %v1210_v24 = vmul.f32 %v3205_v60, %v1191_v48  ;;  %v1215_v53 = vmul.f32 %v3222_v10, %v1193_v34  ;;  %v1218_v59 = vmul.f32 %v3227_v18, %v1195_v62  ;;  %v2221_v40 = vld [vmem:[#allocation17 + $0x30] sm:$0xff]  ;;  %v2215_v48 = vld [vmem:[#allocation17] sm:$0xff] }
 0x499   :  { %v1217_v60 = vmul.f32 %v3229_v6, %v1194_v57  ;;  %v1219_v0 = vmul.f32 %v3233_v52, %v1195_v62  ;;  %v2229_v41 = vld [vmem:[#allocation20 + $0x30] sm:$0xff] }
 0x49f   :  { %1259 = vperm.xlu2 %2259, %v1207_v36   ;;  %v2219_v36 = vld [vmem:[#allocation17 + $0x20] sm:$0xff] }
 0x4a0   :  { %1256 = vperm.xlu1 %2260, %v1206_v49   ;;  %v2218_v49 = vld [vmem:[#allocation17 + $0x18] sm:$0xff] }
 0x4a7   :  { %1292 = vperm.xlu2 %2259, %v1209_v43   ;;  %v2217_v43 = vld [vmem:[#allocation17 + $0x10] sm:$0xff] }
 0x4a8   :  { %1289 = vperm.xlu1 %2260, %v1208_v56  }
 0x4af   :  { %1325 = vperm.xlu2 %2259, %v1211_v32   ;;  %v2230_v32 = vld [vmem:[#allocation20 + $0x38] sm:$0xff] }
 0x4b0   :  { %1322 = vperm.xlu1 %2260, %v1210_v24  }
 0x4b7   :  { %1358 = vperm.xlu2 %2259, %v1213_v42  }
 0x4b8   :  { %1355 = vperm.xlu1 %2260, %v1212_v44   ;;  %v2228_v44 = vld [vmem:[#allocation20 + $0x28] sm:$0xff] }
 0x4bf   :  { %1421 = vperm.xlu2 %2259, %v1216_v51  }
 0x4c0   :  { %1391 = vperm.xlu1 %2260, %v1215_v53  }
 0x4c7   :  { %1454 = vperm.xlu2 %2259, %v1218_v59  }
 0x4c8   :  { %1424 = vperm.xlu1 %2260, %v1217_v60  }
 0x4d0   :  { %1457 = vperm.xlu1 %2260, %v1219_v0  }
 0x4f1   :  { %v1227_v1 = vpop.permute.xlu2 %1226 }
 0x4f2   :  { %v1229_v45 = vperm.slane %v1227_v1, %v3128_v8 }
 0x4f9   :  { %v1260_v19 = vpop.permute.xlu2 %1259 }
 0x4fa   :  { %v1262_v6 = vperm.slane %v1260_v19, %v3128_v8 }
 0x501   :  { %v1293_v16 = vpop.permute.xlu2 %1292 }
 0x502   :  { %v1295_v3 = vperm.slane %v1293_v16, %v3128_v8 }
 0x509   :  { %v1326_v50 = vpop.permute.xlu2 %1325  ;;  %v1389_v23 = vpop.permute.xlu0 %1388 }
 0x50a   :  { %v1224_v63 = vpop.permute.xlu1 %1223  ;;  %v1328_v15 = vperm.slane %v1326_v50, %v3128_v8  ;;  %v1393_v55 = vperm.slane %v1389_v23, %v3125_v5 }
 0x50b   :  { %v1228_v11 = vperm.slane %v1224_v63, %v3125_v5 }
 0x50d   :  { %v1230_v10 = vsel %vm980_vm8, %v1229_v45, %v1228_v11 }
 0x50e   :  { %2054 = vmatmul.msk.f32.vlgmr.msra.gmra.mxu2 %vm1018_vm0, %v1230_v10 }
 0x50f   :  { %1379 = vmatpush.msra.mxu2 %v3059_v4 }
 0x511   :  { %1380 = vmatpush.msra.mxu2 %v3056_v14  ;;  %v1359_v20 = vpop.permute.xlu2 %1358 }
 0x512   :  { %v1257_v18 = vpop.permute.xlu1 %1256  ;;  %v1361_v22 = vperm.slane %v1359_v20, %v3128_v8 }
 0x513   :  { %v1261_v52 = vperm.slane %v1257_v18, %v3125_v5 }
 0x515   :  { %v1263_v2 = vsel %vm980_vm8, %v1262_v6, %v1261_v52 }
 0x516   :  { %2055 = vmatmul.msk.f32.vlgmr.msra.gmra.mxu3 %vm1018_vm0, %v1263_v2 }
 0x517   :  { %1412 = vmatpush.msra.mxu3 %v3062_v7 }
 0x519   :  { %1413 = vmatpush.msra.mxu3 %v3050_v61  ;;  %v1422_v26 = vpop.permute.xlu2 %1421 }
 0x51a   :  { %v1290_v38 = vpop.permute.xlu1 %1289  ;;  %v1426_v29 = vperm.slane %v1422_v26, %v3125_v5  ;;  %v2224_v26 = vld [vmem:[#allocation20 + $0x8] sm:$0xff] }
 0x51b   :  { %v1294_v4 = vperm.slane %v1290_v38, %v3125_v5 }
 0x51d   :  { %v1296_v14 = vsel %vm980_vm8, %v1295_v3, %v1294_v4 }
 0x51e   :  { %2056 = vmatmul.msk.f32.vlgmr.msrb.gmra.mxu2 %vm1018_vm0, %v1296_v14 }
 0x51f   :  { %1445 = vmatpush.msrb.mxu2 %v3065_v9 }
 0x521   :  { %1446 = vmatpush.msrb.mxu2 %v3048_v58  ;;  %v1455_v33 = vpop.permute.xlu2 %1454 }
 0x522   :  { %v1323_v12 = vpop.permute.xlu1 %1322  ;;  %v1459_v34 = vperm.slane %v1455_v33, %v3125_v5 }
 0x523   :  { %v1327_v7 = vperm.slane %v1323_v12, %v3125_v5 }
 0x525   :  { %v1329_v61 = vsel %vm980_vm8, %v1328_v15, %v1327_v7 }
 0x526   :  { %2057 = vmatmul.msk.f32.vlgmr.msrb.gmra.mxu3 %vm1018_vm0, %v1329_v61 }
 0x527   :  { %1478 = vmatpush.msrb.mxu3 %v3071_v17 }
 0x529   :  { %1479 = vmatpush.msrb.mxu3 %v3068_v13 }
 0x52a   :  { %v1356_v21 = vpop.permute.xlu1 %1355 }
 0x52b   :  { %v1360_v9 = vperm.slane %v1356_v21, %v3125_v5 }
 0x52d   :  { %v1362_v58 = vsel %vm980_vm8, %v1361_v22, %v1360_v9 }
 0x52e   :  { %2058 = vmatmul.msk.f32.vlgmr.msra.gmra.mxu2 %vm1018_vm0, %v1362_v58 }
 0x52f   :  { %1605 = vmatpush.bf16.msra.mxu2 %v2222_v46  ;;  %v2264_v46 = vld [vmem:[%s3354_s13] ss:$0 sm:$0xff]  ;;  %s2802_s13 = smov [#allocation22]  }
 0x530   :  { %s1806_s18 = sshll.u32 %s2802_s13, 4  ;;  %s1807_s18 = int_to_ptr.vmem [resolvable:$true] %s1806_s18 }
 0x532   :  { %v1392_v37 = vpop.permute.xlu1 %1391 }
 0x533   :  { %v1394_v25 = vperm.slane %v1392_v37, %v3128_v8  ;;  %1606 = vmatpush.bf16.msra.mxu2 %v2221_v40 }
 0x535   :  { %v1395_v17 = vsel %vm980_vm8, %v1394_v25, %v1393_v55  ;;  %v2227_v55 = vld [vmem:[#allocation20 + $0x20] sm:$0xff]  ;;  %v2226_v25 = vld [vmem:[#allocation20 + $0x18] sm:$0xff] }
 0x536   :  { %2059 = vmatmul.msk.f32.vlgmr.msra.gmra.mxu3 %vm1018_vm0, %v1395_v17  ;;  %v2225_v17 = vld [vmem:[#allocation20 + $0x10] sm:$0xff] }
 0x537   :  { %1607 = vmatpush.bf16.msra.mxu2 %v2220_v47 }
 0x53a   :  { %v1425_v13 = vpop.permute.xlu1 %1424 }
 0x53b   :  { %v1427_v31 = vperm.slane %v1425_v13, %v3128_v8  ;;  %1608 = vmatpush.bf16.msra.mxu2 %v2219_v36  ;;  %v2223_v13 = vld [vmem:[#allocation20] sm:$0xff] }
 0x53d   :  { %v1428_v30 = vsel %vm980_vm8, %v1427_v31, %v1426_v29  ;;  %v2263_v29 = vld [vmem:[#allocation19] ss:$0 sm:$0xff] }
 0x53e   :  { %2060 = vmatmul.msk.f32.vlgmr.msrb.gmra.mxu2 %vm1018_vm0, %v1428_v30 }
 0x53f   :  { %1609 = vmatpush.bf16.msra.mxu2 %v2218_v49 }
 0x542   :  { %v1458_v27 = vpop.permute.xlu1 %1457 }
 0x543   :  { %v1460_v35 = vperm.slane %v1458_v27, %v3128_v8  ;;  %1610 = vmatpush.bf16.msra.mxu2 %v2217_v43  ;;  %v2216_v8 = vld [vmem:[#allocation17 + $0x8] sm:$0xff] }
 0x545   :  { %v1461_v39 = vsel %vm980_vm8, %v1460_v35, %v1459_v34 }
 0x546   :  { %2061 = vmatmul.msk.f32.vlgmr.msrb.gmra.mxu3 %vm1018_vm0, %v1461_v39 }
 0x547   :  { %1611 = vmatpush.bf16.msra.mxu2 %v2216_v8 }
 0x54b   :  { %1612 = vmatpush.bf16.msra.mxu2 %v2215_v48 }
 0x54f   :  { %1757 = vmatpush.bf16.msrb.mxu2 %v2230_v32 }
 0x553   :  { %1758 = vmatpush.bf16.msrb.mxu2 %v2229_v41 }
 0x557   :  { %1759 = vmatpush.bf16.msrb.mxu2 %v2228_v44 }
 0x55b   :  { %1760 = vmatpush.bf16.msrb.mxu2 %v2227_v55 }
 0x55f   :  { %1761 = vmatpush.bf16.msrb.mxu2 %v2226_v25 }
 0x563   :  { %1762 = vmatpush.bf16.msrb.mxu2 %v2225_v17 }
 0x567   :  { %1763 = vmatpush.bf16.msrb.mxu2 %v2224_v26 }
 0x56b   :  { %1764 = vmatpush.bf16.msrb.mxu2 %v2223_v13 }
 0x591   :  { %v1250_v54 = vpop.f32.mrf.mxu2 }
 0x592   :  { %v1501_v45 = vpack.c.bf16 %v1250_v54, %v1250_v54 }
 0x594   :  { %v1533_v2 = vunpack.c.l.b16 %v1501_v45 }
 0x599   :  { %v1283_v5 = vpop.f32.mrf.mxu3 }
 0x59a   :  { %v1502_v57 = vpack.c.bf16 %v1283_v5, %v1283_v5 }
 0x59c   :  { %v1534_v0 = vunpack.c.l.b16 %v1502_v57 }
 0x59e   :  { %v1541_v18 = vrot.slane %v1534_v0, 7 }
 0x5a0   :  { %v1542_v14 = vsel %vm1003_vm9, %v1541_v18, %v1533_v2 }
 0x5a1   :  { %v1316_v56 = vpop.f32.mrf.mxu2 }
 0x5a2   :  { %v1503_v51 = vpack.c.bf16 %v1316_v56, %v1316_v56 }
 0x5a4   :  { %v1535_v19 = vunpack.c.l.b16 %v1503_v51 }
 0x5a6   :  { %v1543_v52 = vrot.slane %v1535_v19, 6 }
 0x5a8   :  { %v1544_v15 = vsel %vm1005_vm10, %v1543_v52, %v1542_v14 }
 0x5a9   :  { %v1349_v24 = vpop.f32.mrf.mxu3 }
 0x5aa   :  { %v1504_v62 = vpack.c.bf16 %v1349_v24, %v1349_v24 }
 0x5ac   :  { %v1536_v11 = vunpack.c.l.b16 %v1504_v62 }
 0x5ae   :  { %v1545_v38 = vrot.slane %v1536_v11, 5 }
 0x5b0   :  { %v1546_v61 = vsel %vm1007_vm11, %v1545_v38, %v1544_v15 }
 0x5b1   :  { %v1382_v42 = vpop.f32.mrf.mxu2 }
 0x5b2   :  { %v1505_v59 = vpack.c.bf16 %v1382_v42, %v1382_v42 }
 0x5b4   :  { %v1537_v10 = vunpack.c.l.b16 %v1505_v59 }
 0x5b6   :  { %v1547_v3 = vrot.slane %v1537_v10, 4 }
 0x5b8   :  { %v1548_v21 = vsel %vm1009_vm12, %v1547_v3, %v1546_v61 }
 0x5b9   :  { %v1415_v53 = vpop.f32.mrf.mxu3 }
 0x5ba   :  { %v1506_v1 = vpack.c.bf16 %v1415_v53, %v1415_v53 }
 0x5bc   :  { %v1538_v6 = vunpack.c.l.b16 %v1506_v1 }
 0x5be   :  { %v1549_v50 = vrot.slane %v1538_v6, 3 }
 0x5c0   :  { %v1550_v22 = vsel %vm1011_vm13, %v1549_v50, %v1548_v21 }
 0x5c1   :  { %v1448_v60 = vpop.f32.mrf.mxu2 }
 0x5c2   :  { %v1507_v63 = vpack.c.bf16 %v1448_v60, %v1448_v60 }
 0x5c4   :  { %v1539_v16 = vunpack.c.l.b16 %v1507_v63 }
 0x5c6   :  { %v1551_v7 = vrot.slane %v1539_v16, 2 }
 0x5c8   :  { %v1552_v58 = vsel %vm1013_vm14, %v1551_v7, %v1550_v22 }
 0x5c9   :  { %v1481_v4 = vpop.f32.mrf.mxu3 }
 0x5ca   :  { %v1508_v12 = vpack.c.bf16 %v1481_v4, %v1481_v4 }
 0x5cc   :  { %v1540_v20 = vunpack.c.l.b16 %v1508_v12 }
 0x5ce   :  { %v1553_v9 = vrot.slane %v1540_v20, 1 }
 0x5d0   :  { %v1554_v23 = vsel %vm1015_vm15, %v1553_v9, %v1552_v58 }
 0x5d1   :  { %v1555_v37 = vpack.c.b16 %v1554_v23, %v1554_v23 }
 0x5d3   :  { %1613 = vmatmul.bf16.vlgmr.msra.gmra.mxu2 %v1555_v37 }
 0x656   :  { %v1614_v31 = vpop.f32.mrf.mxu2 }
 0x657   :  { %v1676_v30 = vadd.f32 %v3080_v28, %v1614_v31 }
 0x659   :  { %v1683_v33 = vadd.f32 %v2263_v29, %v1676_v30 }
 0x65b   :  { %2309 = vtanh.f32 %v1683_v33 }
 0x65e   :  { %v1616_v27 = vpop.f32.mrf.mxu2 }
 0x661   :  { %v2310_v34 = vpop.eup %2309 }
 0x662   :  { %v1685_v35 = vpack.c.bf16 %v2310_v34, %v2310_v34 }
 0x664   :  { %1686 = vst [vmem:[#allocation3] sm:$0xf] %v1685_v35 }
 0x66b   :  { %v1688_v39 = vld [vmem:[#allocation3] sm:$0xf] }
 0x66c   :  { %1765 = vmatmul.bf16.vlgmr.msrb.gmra.mxu2 %v1688_v39 }
 0x6ef   :  { %v1766_v40 = vpop.f32.mrf.mxu2 }
 0x6f0   :  { %v1767_v47 = vadd.f32 %v2264_v46, %v1766_v40 }
 0x6f2   :  { %1778 = vmax.xlane.f32.xlu0 %v1767_v47 }
 0x6f7   :  { %v1768_v36 = vpop.f32.mrf.mxu2 }
 0x765   :  { %v1779_v49 = vpop.xlane.xlu0 %1778 }
 0x766   :  { %v1780_v54 = vsub.f32 %v1767_v47, %v1779_v49 }
 0x768   :  { %v1781_v43 = vmul.f32 1.442695, %v1780_v54 }
 0x76a   :  { %2311 = vpow2.f32 %v1781_v43 }
 0x770   :  { %v2312_v28 = vpop.eup %2311 }
 0x771   :  { %1783 = vadd.xlane.f32.xlu2 %v2312_v28 }
 0x7e4   :  { %v1784_v5 = vpop.xlane.xlu2 %1783 }
 0x7e5   :  { %2313 = vrcp.f32 %v1784_v5  ;;  %v1796_v32 = vand.u32 2147483648, %v1784_v5  ;;  %v1794_v41 = vand.u32 2147483647, %v1784_v5  ;;  %vm1790_vm2 = vweird.f32 %v1784_v5 }
 0x7e7   :  { %v1797_v44 = vor.u32 1.1754944e-38, %v1796_v32  ;;  %vm1795_vm4 = vcmp.eq.f32.partialorder %v1794_v41, 8.507059e+37 }
 0x7eb   :  { %v2314_v56 = vpop.eup %2313 }
 0x7ec   :  { %v1786_v8 = vmul.f32 %v2314_v56, %v1784_v5  ;;  %vm1791_vm1 = vweird.f32 %v2314_v56 }
 0x7ed   :  { %vm1792_vm3 = vmor %vm1790_vm2, %vm1791_vm1 }
 0x7ee   :  { %v1787_v48 = vsub.f32 1.0, %v1786_v8 }
 0x7f0   :  { %v1788_v24 = vmul.f32 %v2314_v56, %v1787_v48 }
 0x7f2   :  { %v1789_v42 = vadd.f32 %v2314_v56, %v1788_v24 }
 0x7f4   :  { %v1793_v57 = vsel %vm1792_vm3, %v2314_v56, %v1789_v42 }
 0x7f5   :  { %v1798_v51 = vsel %vm1795_vm4, %v1797_v44, %v1793_v57 }
 0x7f6   :  { %v1799_v53 = vmul.f32 %v2312_v28, %v1798_v51 }
 0x7f8   :  { %1800 = vst [vmem:[#allocation22] sm:$0xff] %v1799_v53 }
 0x7f9   :  { %1811 = dma.vmem_to_hbm [thread:$0]  %s1807_s18, 128, %s1809_s20, [#allocation10]  }
 0x7fa   :  { %2773 = dma.done.wait [#allocation10], 128  }
 0x7fb   :  { %2774 = vsyncadd [#allocation10], 4294967168 }
 0x7fc   :  { %2775 = dma.done.wait [#allocation24], 128  }
 0x7fd   :  { %2776 = vsyncadd [#allocation24], 4294967168 }
 0x7fe   :  { %1831 = vsyncpa [#allocation9], 1 }
 0x7ff   :  { %1832 = vsyncpa [#allocation12], 1 }
 0x800   :  { %1833 = vsyncpa [#allocation15], 1 }
 0x801   :  { %1834 = vsyncpa [#allocation18], 1 }
 0x802   :  { %1835 = vsyncpa [#allocation21], 1 }
 0x803   :  { %1836 = vsyncpa [#allocation10], 1 }
 0x804   :  { %1837 = vsyncpa [#allocation24], 1 }
 0x805   :  { %1838 = vsyncmov [#allocation5] }
 0x808   :  { %s1839_s14 = vpop.sfrf %1838 }
 0x809   :  { %p2158_p12 = scmp.ne.s32.totalorder %s1839_s14, 0 }
 0x80b   :  { %1843 = shalt.err (%p2158_p12)  }

</bundles_post_ra>
